<compile_context>
chip_gen: v5e
topology: v5e:2x2
jax: 0.10.0
libtpu: 0.0.40
codegen_flags: <defaults>
</compile_context>

<pallas_src>
import math
import functools

import jax
import jax.numpy as jnp
from jax.experimental import pallas as pl
from jax.experimental.pallas import tpu as pltpu


def _layernorm(h, w, b, eps=1e-5):
    mu = jnp.mean(h, axis=-1, keepdims=True)
    var = jnp.mean((h - mu) ** 2, axis=-1, keepdims=True)
    return (h - mu) * jax.lax.rsqrt(var + eps) * w + b


def _block_kernel(n_heads, kt_total,
                  x_ref,
                  ln1w_ref, ln1b_ref,
                  wq_ref, bq_ref, wk_ref, bk_ref, wv_ref, bv_ref,
                  wo_ref, bo_ref,
                  ln2w_ref, ln2b_ref,
                  w1_ref, b1_ref, w2_ref, b2_ref,
                  o_ref,
                  h2_scr, acc_scr):
    kt = pl.program_id(1)          # MLP hidden-tile index (reduction axis)

    # ---------------- attention phase: only on the first hidden tile ----------------
    @pl.when(kt == 0)
    def _attend():
        x = x_ref[0]                                   # (L, D) f32 slab for this batch element
        L, D = x.shape
        dh = D // n_heads
        scale = 1.0 / math.sqrt(dh)

        h = _layernorm(x, ln1w_ref[...], ln1b_ref[...])        # f32
        hb = h.astype(jnp.bfloat16)                            # bf16 MXU operand

        q = jnp.dot(hb, wq_ref[...], preferred_element_type=jnp.float32) + bq_ref[...]
        k = jnp.dot(hb, wk_ref[...], preferred_element_type=jnp.float32) + bk_ref[...]
        v = jnp.dot(hb, wv_ref[...], preferred_element_type=jnp.float32) + bv_ref[...]

        q = q * scale                                          # fold scale into q (f32)

        q3 = q.reshape(L, n_heads, dh).astype(jnp.bfloat16)
        k3 = k.reshape(L, n_heads, dh).astype(jnp.bfloat16)
        v3 = v.reshape(L, n_heads, dh).astype(jnp.bfloat16)

        # Head-batched contraction (heads = batch dim); no per-head loop / concatenate.
        s = jnp.einsum('qhd,khd->hqk', q3, k3,
                       preferred_element_type=jnp.float32)     # (H, L, L) f32

        row = jax.lax.broadcasted_iota(jnp.int32, (1, L, L), 1)
        col = jax.lax.broadcasted_iota(jnp.int32, (1, L, L), 2)
        s = jnp.where(row >= col, s, -1e30)                    # causal mask

        m = jnp.max(s, axis=-1, keepdims=True)
        p = jnp.exp(s - m)
        denom = jnp.sum(p, axis=-1, keepdims=True)
        p = p * pl.reciprocal(denom, approx=True)              # EUP, not VALU divide

        o3 = jnp.einsum('hqk,khd->qhd', p.astype(jnp.bfloat16), v3,
                        preferred_element_type=jnp.float32)    # (L, H, dh) f32
        attn = o3.reshape(L, D)
        attn = jnp.dot(attn.astype(jnp.bfloat16), wo_ref[...],
                       preferred_element_type=jnp.float32) + bo_ref[...]

        x1 = x + attn                                          # residual 1 (f32)

        h2 = _layernorm(x1, ln2w_ref[...], ln2b_ref[...])
        h2_scr[...] = h2.astype(jnp.bfloat16)                  # reused by every MLP tile
        acc_scr[...] = x1                                      # accumulator starts at residual

    # --------------- streamed MLP tile: acc += gelu(h2 @ w1_k + b1_k) @ w2_k ---------------
    m1 = jnp.dot(h2_scr[...], w1_ref[...],
                 preferred_element_type=jnp.float32) + b1_ref[...]      # (L, TH) f32
    g = jax.nn.gelu(m1, approximate=True)                               # tanh GELU, f32
    acc_scr[...] += jnp.dot(g.astype(jnp.bfloat16), w2_ref[...],
                            preferred_element_type=jnp.float32)         # (L, D) f32

    @pl.when(kt == kt_total - 1)
    def _finalize():
        o_ref[0] = (acc_scr[...] + b2_ref[...]).astype(o_ref.dtype)


def _pick_hidden_tile(H, target=512):
    if H <= target:
        return H
    for th in (512, 384, 256, 128):
        if H % th == 0:
            return th
    return H


def transformer_block(x, params, n_heads):
    """x: (B, L, D) float32.  params: dict of f32 weights (see init_params)."""
    B, L, D = x.shape
    H = params["w1"].shape[1]
    TH = _pick_hidden_tile(H)
    KT = H // TH

    p = dict(params)
    # Matmul operands -> bf16 (halves weight DMA + VMEM, enables bf16 MXU peak).
    for name in ("wq", "wk", "wv", "wo", "w1", "w2"):
        p[name] = p[name].astype(jnp.bfloat16)
    # 1-D params stay f32, presented as (1, N) lane-dense slabs.
    for name in ("ln1_w", "ln1_b", "bq", "bk", "bv", "bo", "ln2_w", "ln2_b", "b1", "b2"):
        p[name] = p[name].astype(jnp.float32).reshape(1, -1)

    def const2d(shape):
        return pl.BlockSpec(shape, lambda b, k: (0, 0))   # same block every step -> no re-DMA

    in_specs = [
        pl.BlockSpec((1, L, D), lambda b, k: (b, 0, 0)),   # x
        const2d((1, D)), const2d((1, D)),                  # ln1 w/b
        const2d((D, D)), const2d((1, D)),                  # wq, bq
        const2d((D, D)), const2d((1, D)),                  # wk, bk
        const2d((D, D)), const2d((1, D)),                  # wv, bv
        const2d((D, D)), const2d((1, D)),                  # wo, bo
        const2d((1, D)), const2d((1, D)),                  # ln2 w/b
        pl.BlockSpec((D, TH), lambda b, k: (0, k)),        # w1 hidden tile (streamed)
        pl.BlockSpec((1, TH), lambda b, k: (0, k)),        # b1 hidden tile
        pl.BlockSpec((TH, D), lambda b, k: (k, 0)),        # w2 hidden tile (streamed)
        const2d((1, D)),                                   # b2
    ]
    out_spec = pl.BlockSpec((1, L, D), lambda b, k: (b, 0, 0))

    ordered = [p["ln1_w"], p["ln1_b"],
               p["wq"], p["bq"], p["wk"], p["bk"], p["wv"], p["bv"],
               p["wo"], p["bo"],
               p["ln2_w"], p["ln2_b"],
               p["w1"], p["b1"], p["w2"], p["b2"]]

    kernel = functools.partial(_block_kernel, n_heads, KT)

    return pl.pallas_call(
        kernel,
        out_shape=jax.ShapeDtypeStruct((B, L, D), jnp.float32),
        grid_spec=pltpu.PrefetchScalarGridSpec(
            num_scalar_prefetch=0,
            grid=(B, KT),                                  # hidden-reduction axis last
            in_specs=in_specs,
            out_specs=out_spec,
            scratch_shapes=[pltpu.VMEM((L, D), jnp.bfloat16),   # h2 (LN2 output), bf16
                            pltpu.VMEM((L, D), jnp.float32)],   # f32 accumulator (x1 + MLP)
        ),
        compiler_params=pltpu.CompilerParams(
            dimension_semantics=("parallel", "arbitrary"),
            vmem_limit_bytes=48 * 1024 * 1024,             # explicit, fits v7x 64 MiB budget
        ),
    )(x, *ordered)


def init_params(key, d_model):
    H = 4 * d_model
    ks = jax.random.split(key, 8)
    std = 0.02
    return dict(
        ln1_w=jnp.ones((d_model,), jnp.float32),
        ln1_b=jnp.zeros((d_model,), jnp.float32),
        wq=std * jax.random.normal(ks[0], (d_model, d_model), jnp.float32),
        bq=jnp.zeros((d_model,), jnp.float32),
        wk=std * jax.random.normal(ks[1], (d_model, d_model), jnp.float32),
        bk=jnp.zeros((d_model,), jnp.float32),
        wv=std * jax.random.normal(ks[2], (d_model, d_model), jnp.float32),
        bv=jnp.zeros((d_model,), jnp.float32),
        wo=std * jax.random.normal(ks[3], (d_model, d_model), jnp.float32),
        bo=jnp.zeros((d_model,), jnp.float32),
        ln2_w=jnp.ones((d_model,), jnp.float32),
        ln2_b=jnp.zeros((d_model,), jnp.float32),
        w1=std * jax.random.normal(ks[4], (d_model, H), jnp.float32),
        b1=jnp.zeros((H,), jnp.float32),
        w2=std * jax.random.normal(ks[5], (H, d_model), jnp.float32),
        b2=jnp.zeros((d_model,), jnp.float32),
    )


def reference_block(x, p, n_heads):
    """Pure-JAX f32 reference with identical semantics (for correctness check)."""
    B, L, D = x.shape
    dh = D // n_heads
    scale = 1.0 / math.sqrt(dh)

    def ln(h, w, b):
        mu = jnp.mean(h, axis=-1, keepdims=True)
        var = jnp.mean((h - mu) ** 2, axis=-1, keepdims=True)
        return (h - mu) * jax.lax.rsqrt(var + 1e-5) * w + b

    h = ln(x, p["ln1_w"], p["ln1_b"])
    q = (h @ p["wq"] + p["bq"]).reshape(B, L, n_heads, dh).transpose(0, 2, 1, 3)
    k = (h @ p["wk"] + p["bk"]).reshape(B, L, n_heads, dh).transpose(0, 2, 1, 3)
    v = (h @ p["wv"] + p["bv"]).reshape(B, L, n_heads, dh).transpose(0, 2, 1, 3)
    s = jnp.einsum("bhqd,bhkd->bhqk", q, k) * scale
    mask = jnp.tril(jnp.ones((L, L), bool))
    s = jnp.where(mask, s, -1e30)
    pattn = jax.nn.softmax(s, axis=-1)
    o = jnp.einsum("bhqk,bhkd->bhqd", pattn, v).transpose(0, 2, 1, 3).reshape(B, L, D)
    o = o @ p["wo"] + p["bo"]
    x1 = x + o
    h2 = ln(x1, p["ln2_w"], p["ln2_b"])
    m = jax.nn.gelu(h2 @ p["w1"] + p["b1"], approximate=True) @ p["w2"] + p["b2"]
    return x1 + m


if __name__ == "__main__":
    B, L, D, NH = 2, 8, 32, 4

    key = jax.random.PRNGKey(0)
    kx, kp = jax.random.split(key)
    x = jax.random.normal(kx, (B, L, D), jnp.float32)
    params = init_params(kp, D)

    out = transformer_block(x, params, NH)
    out = jax.block_until_ready(out)

    ref = reference_block(x, params, NH)
    assert out.shape == (B, L, D)
    # bf16 MXU operands + approx reciprocal => loosened tolerance vs the f32 reference
    assert jnp.allclose(out, ref, atol=2e-2, rtol=2e-2), "mismatch vs JAX reference"

    print("KERNEL_OK")
</pallas_src>

<mosaic_0001>
module attributes {stable_mosaic.version = 11 : i64} {
  func.func @_block_kernel(%arg0: i32, %arg1: i32, %arg2: memref<1x8x32xf32, #tpu.memory_space<vmem>>, %arg3: memref<1x32xf32, #tpu.memory_space<vmem>>, %arg4: memref<1x32xf32, #tpu.memory_space<vmem>>, %arg5: memref<32x32xbf16, #tpu.memory_space<vmem>>, %arg6: memref<1x32xf32, #tpu.memory_space<vmem>>, %arg7: memref<32x32xbf16, #tpu.memory_space<vmem>>, %arg8: memref<1x32xf32, #tpu.memory_space<vmem>>, %arg9: memref<32x32xbf16, #tpu.memory_space<vmem>>, %arg10: memref<1x32xf32, #tpu.memory_space<vmem>>, %arg11: memref<32x32xbf16, #tpu.memory_space<vmem>>, %arg12: memref<1x32xf32, #tpu.memory_space<vmem>>, %arg13: memref<1x32xf32, #tpu.memory_space<vmem>>, %arg14: memref<1x32xf32, #tpu.memory_space<vmem>>, %arg15: memref<32x128xbf16, #tpu.memory_space<vmem>>, %arg16: memref<1x128xf32, #tpu.memory_space<vmem>>, %arg17: memref<128x32xbf16, #tpu.memory_space<vmem>>, %arg18: memref<1x32xf32, #tpu.memory_space<vmem>>, %arg19: memref<1x8x32xf32, #tpu.memory_space<vmem>>, %arg20: memref<8x32xbf16, #tpu.memory_space<vmem>>, %arg21: memref<8x32xf32, #tpu.memory_space<vmem>>) attributes {dimension_semantics = [#tpu.dimension_semantics<parallel>, #tpu.dimension_semantics<arbitrary>], iteration_bounds = array<i64: 2, 1>, scalar_prefetch = 0 : i64, scratch_operands = 2 : i64, tpu.core_type = #tpu.core_type<tc>, window_params = [{transform_indices = @transform_0, window_bounds = array<i64: 1, 8, 32>}, {pipeline_mode = #tpu.pipeline_mode<synchronous>, transform_indices = @transform_1, window_bounds = array<i64: 1, 32>}, {pipeline_mode = #tpu.pipeline_mode<synchronous>, transform_indices = @transform_2, window_bounds = array<i64: 1, 32>}, {pipeline_mode = #tpu.pipeline_mode<synchronous>, transform_indices = @transform_3, window_bounds = array<i64: 32, 32>}, {pipeline_mode = #tpu.pipeline_mode<synchronous>, transform_indices = @transform_4, window_bounds = array<i64: 1, 32>}, {pipeline_mode = #tpu.pipeline_mode<synchronous>, transform_indices = @transform_5, window_bounds = array<i64: 32, 32>}, {pipeline_mode = #tpu.pipeline_mode<synchronous>, transform_indices = @transform_6, window_bounds = array<i64: 1, 32>}, {pipeline_mode = #tpu.pipeline_mode<synchronous>, transform_indices = @transform_7, window_bounds = array<i64: 32, 32>}, {pipeline_mode = #tpu.pipeline_mode<synchronous>, transform_indices = @transform_8, window_bounds = array<i64: 1, 32>}, {pipeline_mode = #tpu.pipeline_mode<synchronous>, transform_indices = @transform_9, window_bounds = array<i64: 32, 32>}, {pipeline_mode = #tpu.pipeline_mode<synchronous>, transform_indices = @transform_10, window_bounds = array<i64: 1, 32>}, {pipeline_mode = #tpu.pipeline_mode<synchronous>, transform_indices = @transform_11, window_bounds = array<i64: 1, 32>}, {pipeline_mode = #tpu.pipeline_mode<synchronous>, transform_indices = @transform_12, window_bounds = array<i64: 1, 32>}, {transform_indices = @transform_13, window_bounds = array<i64: 32, 128>}, {transform_indices = @transform_14, window_bounds = array<i64: 1, 128>}, {transform_indices = @transform_15, window_bounds = array<i64: 128, 32>}, {pipeline_mode = #tpu.pipeline_mode<synchronous>, transform_indices = @transform_16, window_bounds = array<i64: 1, 32>}, {transform_indices = @transform_17, window_bounds = array<i64: 1, 8, 32>}]} {
    %c0_i32 = arith.constant 0 : i32
    %0 = arith.cmpi eq, %arg1, %c0_i32 : i32
    %1 = arith.extui %0 : i1 to i32
    %c0_i32_0 = arith.constant 0 : i32
    %2 = arith.cmpi ne, %1, %c0_i32_0 : i32
    scf.if %2 {
      %c0_19 = arith.constant 0 : index
      %c0_20 = arith.constant 0 : index
      %c0_21 = arith.constant 0 : index
      %31 = vector.load %arg2[%c0_19, %c0_20, %c0_21] : memref<1x8x32xf32, #tpu.memory_space<vmem>>, vector<1x8x32xf32>
      %32 = vector.shape_cast %31 : vector<1x8x32xf32> to vector<8x32xf32>
      %c0_22 = arith.constant 0 : index
      %c0_23 = arith.constant 0 : index
      %33 = vector.load %arg3[%c0_22, %c0_23] : memref<1x32xf32, #tpu.memory_space<vmem>>, vector<1x32xf32>
      %c0_24 = arith.constant 0 : index
      %c0_25 = arith.constant 0 : index
      %34 = vector.load %arg4[%c0_24, %c0_25] : memref<1x32xf32, #tpu.memory_space<vmem>>, vector<1x32xf32>
      %cst_26 = arith.constant dense<0.000000e+00> : vector<8xf32>
      %35 = vector.multi_reduction <add>, %32, %cst_26 [1] : vector<8x32xf32> to vector<8xf32>
      %36 = vector.shape_cast %35 : vector<8xf32> to vector<8x1xf32>
      %cst_27 = arith.constant 3.200000e+01 : f32
      %37 = vector.broadcast %cst_27 : f32 to vector<8x1xf32>
      %38 = arith.divf %36, %37 : vector<8x1xf32>
      %39 = vector.broadcast %38 : vector<8x1xf32> to vector<8x32xf32>
      %40 = arith.subf %32, %39 : vector<8x32xf32>
      %41 = arith.mulf %40, %40 : vector<8x32xf32>
      %cst_28 = arith.constant dense<0.000000e+00> : vector<8xf32>
      %42 = vector.multi_reduction <add>, %41, %cst_28 [1] : vector<8x32xf32> to vector<8xf32>
      %43 = vector.shape_cast %42 : vector<8xf32> to vector<8x1xf32>
      %cst_29 = arith.constant 3.200000e+01 : f32
      %44 = vector.broadcast %cst_29 : f32 to vector<8x1xf32>
      %45 = arith.divf %43, %44 : vector<8x1xf32>
      %46 = vector.broadcast %38 : vector<8x1xf32> to vector<8x32xf32>
      %47 = arith.subf %32, %46 : vector<8x32xf32>
      %cst_30 = arith.constant 9.99999974E-6 : f32
      %48 = vector.broadcast %cst_30 : f32 to vector<8x1xf32>
      %49 = arith.addf %45, %48 : vector<8x1xf32>
      %50 = math.rsqrt %49 : vector<8x1xf32>
      %51 = vector.broadcast %50 : vector<8x1xf32> to vector<8x32xf32>
      %52 = arith.mulf %47, %51 : vector<8x32xf32>
      %53 = vector.broadcast %33 : vector<1x32xf32> to vector<8x32xf32>
      %54 = arith.mulf %52, %53 : vector<8x32xf32>
      %55 = vector.broadcast %34 : vector<1x32xf32> to vector<8x32xf32>
      %56 = arith.addf %54, %55 : vector<8x32xf32>
      %57 = arith.truncf %56 : vector<8x32xf32> to vector<8x32xbf16>
      %c0_31 = arith.constant 0 : index
      %c0_32 = arith.constant 0 : index
      %58 = vector.load %arg5[%c0_31, %c0_32] : memref<32x32xbf16, #tpu.memory_space<vmem>>, vector<32x32xbf16>
      %cst_33 = arith.constant dense<0.000000e+00> : vector<8x32xf32>
      %59 = tpu.matmul %57, %58, %cst_33 {dimension_numbers = #tpu.dot_dimension_numbers<[1], [0], [0], [1], [0, 0, 1, 1], [], []>} : vector<8x32xbf16>, vector<32x32xbf16>, vector<8x32xf32> -> vector<8x32xf32>
      %c0_34 = arith.constant 0 : index
      %c0_35 = arith.constant 0 : index
      %60 = vector.load %arg6[%c0_34, %c0_35] : memref<1x32xf32, #tpu.memory_space<vmem>>, vector<1x32xf32>
      %61 = vector.broadcast %60 : vector<1x32xf32> to vector<8x32xf32>
      %62 = arith.addf %59, %61 : vector<8x32xf32>
      %c0_36 = arith.constant 0 : index
      %c0_37 = arith.constant 0 : index
      %63 = vector.load %arg7[%c0_36, %c0_37] : memref<32x32xbf16, #tpu.memory_space<vmem>>, vector<32x32xbf16>
      %cst_38 = arith.constant dense<0.000000e+00> : vector<8x32xf32>
      %64 = tpu.matmul %57, %63, %cst_38 {dimension_numbers = #tpu.dot_dimension_numbers<[1], [0], [0], [1], [0, 0, 1, 1], [], []>} : vector<8x32xbf16>, vector<32x32xbf16>, vector<8x32xf32> -> vector<8x32xf32>
      %c0_39 = arith.constant 0 : index
      %c0_40 = arith.constant 0 : index
      %65 = vector.load %arg8[%c0_39, %c0_40] : memref<1x32xf32, #tpu.memory_space<vmem>>, vector<1x32xf32>
      %66 = vector.broadcast %65 : vector<1x32xf32> to vector<8x32xf32>
      %67 = arith.addf %64, %66 : vector<8x32xf32>
      %c0_41 = arith.constant 0 : index
      %c0_42 = arith.constant 0 : index
      %68 = vector.load %arg9[%c0_41, %c0_42] : memref<32x32xbf16, #tpu.memory_space<vmem>>, vector<32x32xbf16>
      %cst_43 = arith.constant dense<0.000000e+00> : vector<8x32xf32>
      %69 = tpu.matmul %57, %68, %cst_43 {dimension_numbers = #tpu.dot_dimension_numbers<[1], [0], [0], [1], [0, 0, 1, 1], [], []>} : vector<8x32xbf16>, vector<32x32xbf16>, vector<8x32xf32> -> vector<8x32xf32>
      %c0_44 = arith.constant 0 : index
      %c0_45 = arith.constant 0 : index
      %70 = vector.load %arg10[%c0_44, %c0_45] : memref<1x32xf32, #tpu.memory_space<vmem>>, vector<1x32xf32>
      %71 = vector.broadcast %70 : vector<1x32xf32> to vector<8x32xf32>
      %72 = arith.addf %69, %71 : vector<8x32xf32>
      %cst_46 = arith.constant 0.353553385 : f32
      %73 = vector.broadcast %cst_46 : f32 to vector<8x32xf32>
      %74 = arith.mulf %62, %73 : vector<8x32xf32>
      %75 = vector.shape_cast %74 : vector<8x32xf32> to vector<8x4x8xf32>
      %76 = arith.truncf %75 : vector<8x4x8xf32> to vector<8x4x8xbf16>
      %77 = vector.shape_cast %67 : vector<8x32xf32> to vector<8x4x8xf32>
      %78 = arith.truncf %77 : vector<8x4x8xf32> to vector<8x4x8xbf16>
      %79 = vector.shape_cast %72 : vector<8x32xf32> to vector<8x4x8xf32>
      %80 = arith.truncf %79 : vector<8x4x8xf32> to vector<8x4x8xbf16>
      "tpu.trace_start"() <{level = 10 : i32, message = "qhd,khd->hqk"}> : () -> ()
      %cst_47 = arith.constant dense<0.000000e+00> : vector<4x8x8xf32>
      %81 = tpu.matmul %76, %78, %cst_47 {dimension_numbers = #tpu.dot_dimension_numbers<[2], [2], [0], [0], [0, 1, 0, 0, 1, 0], [1], [1]>} : vector<8x4x8xbf16>, vector<8x4x8xbf16>, vector<4x8x8xf32> -> vector<4x8x8xf32>
      "tpu.trace_stop"() : () -> ()
      %82 = tpu.iota {dimensions = array<i32: 1>} : vector<1x8x8xi32>
      %83 = tpu.iota {dimensions = array<i32: 2>} : vector<1x8x8xi32>
      %84 = arith.cmpi sge, %82, %83 : vector<1x8x8xi32>
      %cst_48 = arith.constant -1.000000e+30 : f32
      %85 = vector.shape_cast %84 : vector<1x8x8xi1> to vector<1x8x8xi1>
      %86 = vector.broadcast %85 : vector<1x8x8xi1> to vector<4x8x8xi1>
      %87 = vector.broadcast %cst_48 : f32 to vector<4x8x8xf32>
      %88 = arith.select %86, %81, %87 : vector<4x8x8xi1>, vector<4x8x8xf32>
      %cst_49 = arith.constant dense<0xFF800000> : vector<4x8xf32>
      %89 = vector.multi_reduction <maximumf>, %88, %cst_49 [2] : vector<4x8x8xf32> to vector<4x8xf32>
      %90 = vector.shape_cast %89 : vector<4x8xf32> to vector<4x8x1xf32>
      %91 = vector.broadcast %90 : vector<4x8x1xf32> to vector<4x8x8xf32>
      %92 = arith.subf %88, %91 : vector<4x8x8xf32>
      %93 = math.exp %92 : vector<4x8x8xf32>
      %cst_50 = arith.constant dense<0.000000e+00> : vector<4x8xf32>
      %94 = vector.multi_reduction <add>, %93, %cst_50 [2] : vector<4x8x8xf32> to vector<4x8xf32>
      %95 = vector.shape_cast %94 : vector<4x8xf32> to vector<4x8x1xf32>
      %96 = tpu.reciprocal %95 {approx = true} : vector<4x8x1xf32> -> vector<4x8x1xf32>
      %97 = vector.broadcast %96 : vector<4x8x1xf32> to vector<4x8x8xf32>
      %98 = arith.mulf %93, %97 : vector<4x8x8xf32>
      %99 = arith.truncf %98 : vector<4x8x8xf32> to vector<4x8x8xbf16>
      "tpu.trace_start"() <{level = 10 : i32, message = "hqk,khd->qhd"}> : () -> ()
      %cst_51 = arith.constant dense<0.000000e+00> : vector<4x8x8xf32>
      %100 = tpu.matmul %80, %99, %cst_51 {dimension_numbers = #tpu.dot_dimension_numbers<[0], [2], [2], [1], [0, 1, 0, 2, 1, 1], [1], [0]>} : vector<8x4x8xbf16>, vector<4x8x8xbf16>, vector<4x8x8xf32> -> vector<4x8x8xf32>
      %101 = tpu.transpose %100, [2, 0, 1] : vector<4x8x8xf32> -> vector<8x4x8xf32>
      "tpu.trace_stop"() : () -> ()
      %102 = vector.shape_cast %101 : vector<8x4x8xf32> to vector<8x32xf32>
      %103 = arith.truncf %102 : vector<8x32xf32> to vector<8x32xbf16>
      %c0_52 = arith.constant 0 : index
      %c0_53 = arith.constant 0 : index
      %104 = vector.load %arg11[%c0_52, %c0_53] : memref<32x32xbf16, #tpu.memory_space<vmem>>, vector<32x32xbf16>
      %cst_54 = arith.constant dense<0.000000e+00> : vector<8x32xf32>
      %105 = tpu.matmul %103, %104, %cst_54 {dimension_numbers = #tpu.dot_dimension_numbers<[1], [0], [0], [1], [0, 0, 1, 1], [], []>} : vector<8x32xbf16>, vector<32x32xbf16>, vector<8x32xf32> -> vector<8x32xf32>
      %c0_55 = arith.constant 0 : index
      %c0_56 = arith.constant 0 : index
      %106 = vector.load %arg12[%c0_55, %c0_56] : memref<1x32xf32, #tpu.memory_space<vmem>>, vector<1x32xf32>
      %107 = vector.broadcast %106 : vector<1x32xf32> to vector<8x32xf32>
      %108 = arith.addf %105, %107 : vector<8x32xf32>
      %109 = arith.addf %32, %108 : vector<8x32xf32>
      %c0_57 = arith.constant 0 : index
      %c0_58 = arith.constant 0 : index
      %110 = vector.load %arg13[%c0_57, %c0_58] : memref<1x32xf32, #tpu.memory_space<vmem>>, vector<1x32xf32>
      %c0_59 = arith.constant 0 : index
      %c0_60 = arith.constant 0 : index
      %111 = vector.load %arg14[%c0_59, %c0_60] : memref<1x32xf32, #tpu.memory_space<vmem>>, vector<1x32xf32>
      %cst_61 = arith.constant dense<0.000000e+00> : vector<8xf32>
      %112 = vector.multi_reduction <add>, %109, %cst_61 [1] : vector<8x32xf32> to vector<8xf32>
      %113 = vector.shape_cast %112 : vector<8xf32> to vector<8x1xf32>
      %cst_62 = arith.constant 3.200000e+01 : f32
      %114 = vector.broadcast %cst_62 : f32 to vector<8x1xf32>
      %115 = arith.divf %113, %114 : vector<8x1xf32>
      %116 = vector.broadcast %115 : vector<8x1xf32> to vector<8x32xf32>
      %117 = arith.subf %109, %116 : vector<8x32xf32>
      %118 = arith.mulf %117, %117 : vector<8x32xf32>
      %cst_63 = arith.constant dense<0.000000e+00> : vector<8xf32>
      %119 = vector.multi_reduction <add>, %118, %cst_63 [1] : vector<8x32xf32> to vector<8xf32>
      %120 = vector.shape_cast %119 : vector<8xf32> to vector<8x1xf32>
      %cst_64 = arith.constant 3.200000e+01 : f32
      %121 = vector.broadcast %cst_64 : f32 to vector<8x1xf32>
      %122 = arith.divf %120, %121 : vector<8x1xf32>
      %123 = vector.broadcast %115 : vector<8x1xf32> to vector<8x32xf32>
      %124 = arith.subf %109, %123 : vector<8x32xf32>
      %cst_65 = arith.constant 9.99999974E-6 : f32
      %125 = vector.broadcast %cst_65 : f32 to vector<8x1xf32>
      %126 = arith.addf %122, %125 : vector<8x1xf32>
      %127 = math.rsqrt %126 : vector<8x1xf32>
      %128 = vector.broadcast %127 : vector<8x1xf32> to vector<8x32xf32>
      %129 = arith.mulf %124, %128 : vector<8x32xf32>
      %130 = vector.broadcast %110 : vector<1x32xf32> to vector<8x32xf32>
      %131 = arith.mulf %129, %130 : vector<8x32xf32>
      %132 = vector.broadcast %111 : vector<1x32xf32> to vector<8x32xf32>
      %133 = arith.addf %131, %132 : vector<8x32xf32>
      %134 = arith.truncf %133 : vector<8x32xf32> to vector<8x32xbf16>
      %c0_66 = arith.constant 0 : index
      %c0_67 = arith.constant 0 : index
      %135 = vector.load %arg20[%c0_66, %c0_67] : memref<8x32xbf16, #tpu.memory_space<vmem>>, vector<8x32xbf16>
      tpu.vector_store %arg20[%c0_66, %c0_67], %134 {strides = array<i32>} : memref<8x32xbf16, #tpu.memory_space<vmem>>, vector<8x32xbf16>,
      %c0_68 = arith.constant 0 : index
      %c0_69 = arith.constant 0 : index
      %136 = vector.load %arg21[%c0_68, %c0_69] : memref<8x32xf32, #tpu.memory_space<vmem>>, vector<8x32xf32>
      tpu.vector_store %arg21[%c0_68, %c0_69], %109 {strides = array<i32>} : memref<8x32xf32, #tpu.memory_space<vmem>>, vector<8x32xf32>,
    } else {
    }
    %c0 = arith.constant 0 : index
    %c0_1 = arith.constant 0 : index
    %3 = vector.load %arg20[%c0, %c0_1] : memref<8x32xbf16, #tpu.memory_space<vmem>>, vector<8x32xbf16>
    %c0_2 = arith.constant 0 : index
    %c0_3 = arith.constant 0 : index
    %4 = vector.load %arg15[%c0_2, %c0_3] : memref<32x128xbf16, #tpu.memory_space<vmem>>, vector<32x128xbf16>
    %cst = arith.constant dense<0.000000e+00> : vector<8x128xf32>
    %5 = tpu.matmul %3, %4, %cst {dimension_numbers = #tpu.dot_dimension_numbers<[1], [0], [0], [1], [0, 0, 1, 1], [], []>} : vector<8x32xbf16>, vector<32x128xbf16>, vector<8x128xf32> -> vector<8x128xf32>
    %c0_4 = arith.constant 0 : index
    %c0_5 = arith.constant 0 : index
    %6 = vector.load %arg16[%c0_4, %c0_5] : memref<1x128xf32, #tpu.memory_space<vmem>>, vector<1x128xf32>
    %7 = vector.broadcast %6 : vector<1x128xf32> to vector<8x128xf32>
    %8 = arith.addf %5, %7 : vector<8x128xf32>
    %9 = arith.mulf %8, %8 : vector<8x128xf32>
    %10 = arith.mulf %8, %9 : vector<8x128xf32>
    %cst_6 = arith.constant 4.471500e-02 : f32
    %11 = vector.broadcast %cst_6 : f32 to vector<8x128xf32>
    %12 = arith.mulf %11, %10 : vector<8x128xf32>
    %13 = arith.addf %8, %12 : vector<8x128xf32>
    %cst_7 = arith.constant 0.797884583 : f32
    %14 = vector.broadcast %cst_7 : f32 to vector<8x128xf32>
    %15 = arith.mulf %14, %13 : vector<8x128xf32>
    %16 = math.tanh %15 : vector<8x128xf32>
    %cst_8 = arith.constant 1.000000e+00 : f32
    %17 = vector.broadcast %cst_8 : f32 to vector<8x128xf32>
    %18 = arith.addf %17, %16 : vector<8x128xf32>
    %cst_9 = arith.constant 5.000000e-01 : f32
    %19 = vector.broadcast %cst_9 : f32 to vector<8x128xf32>
    %20 = arith.mulf %19, %18 : vector<8x128xf32>
    %21 = arith.mulf %8, %20 : vector<8x128xf32>
    %c0_10 = arith.constant 0 : index
    %c0_11 = arith.constant 0 : index
    %22 = vector.load %arg21[%c0_10, %c0_11] : memref<8x32xf32, #tpu.memory_space<vmem>>, vector<8x32xf32>
    %23 = arith.truncf %21 : vector<8x128xf32> to vector<8x128xbf16>
    %c0_12 = arith.constant 0 : index
    %c0_13 = arith.constant 0 : index
    %24 = vector.load %arg17[%c0_12, %c0_13] : memref<128x32xbf16, #tpu.memory_space<vmem>>, vector<128x32xbf16>
    %cst_14 = arith.constant dense<0.000000e+00> : vector<8x32xf32>
    %25 = tpu.matmul %23, %24, %cst_14 {dimension_numbers = #tpu.dot_dimension_numbers<[1], [0], [0], [1], [0, 0, 1, 1], [], []>} : vector<8x128xbf16>, vector<128x32xbf16>, vector<8x32xf32> -> vector<8x32xf32>
    %26 = arith.addf %22, %25 : vector<8x32xf32>
    %c0_15 = arith.constant 0 : index
    %c0_16 = arith.constant 0 : index
    %27 = vector.load %arg21[%c0_15, %c0_16] : memref<8x32xf32, #tpu.memory_space<vmem>>, vector<8x32xf32>
    tpu.vector_store %arg21[%c0_15, %c0_16], %26 {strides = array<i32>} : memref<8x32xf32, #tpu.memory_space<vmem>>, vector<8x32xf32>,
    %c0_i32_17 = arith.constant 0 : i32
    %28 = arith.cmpi eq, %arg1, %c0_i32_17 : i32
    %29 = arith.extui %28 : i1 to i32
    %c0_i32_18 = arith.constant 0 : i32
    %30 = arith.cmpi ne, %29, %c0_i32_18 : i32
    scf.if %30 {
      %c0_19 = arith.constant 0 : index
      %c0_20 = arith.constant 0 : index
      %31 = vector.load %arg21[%c0_19, %c0_20] : memref<8x32xf32, #tpu.memory_space<vmem>>, vector<8x32xf32>
      %c0_21 = arith.constant 0 : index
      %c0_22 = arith.constant 0 : index
      %32 = vector.load %arg18[%c0_21, %c0_22] : memref<1x32xf32, #tpu.memory_space<vmem>>, vector<1x32xf32>
      %33 = vector.broadcast %32 : vector<1x32xf32> to vector<8x32xf32>
      %34 = arith.addf %31, %33 : vector<8x32xf32>
      %c0_23 = arith.constant 0 : index
      %c0_24 = arith.constant 0 : index
      %c0_25 = arith.constant 0 : index
      %35 = vector.load %arg19[%c0_23, %c0_24, %c0_25] : memref<1x8x32xf32, #tpu.memory_space<vmem>>, vector<1x8x32xf32>
      %36 = vector.shape_cast %35 : vector<1x8x32xf32> to vector<8x32xf32>
      %37 = vector.shape_cast %34 : vector<8x32xf32> to vector<1x8x32xf32>
      tpu.vector_store %arg19[%c0_23, %c0_24, %c0_25], %37 {strides = array<i32>} : memref<1x8x32xf32, #tpu.memory_space<vmem>>, vector<1x8x32xf32>,
    } else {
    }
    return
  }
  func.func @transform_0(%arg0: i32, %arg1: i32) -> (i32, i32, i32) {
    %c0_i32 = arith.constant 0 : i32
    %c0_i32_0 = arith.constant 0 : i32
    %c0_i32_1 = arith.constant 0 : i32
    return %arg0, %c0_i32, %c0_i32_0 : i32, i32, i32
  }
  func.func @transform_1(%arg0: i32, %arg1: i32) -> (i32, i32) {
    %c0_i32 = arith.constant 0 : i32
    %c0_i32_0 = arith.constant 0 : i32
    %c0_i32_1 = arith.constant 0 : i32
    return %c0_i32, %c0_i32_0 : i32, i32
  }
  func.func @transform_2(%arg0: i32, %arg1: i32) -> (i32, i32) {
    %c0_i32 = arith.constant 0 : i32
    %c0_i32_0 = arith.constant 0 : i32
    %c0_i32_1 = arith.constant 0 : i32
    return %c0_i32, %c0_i32_0 : i32, i32
  }
  func.func @transform_3(%arg0: i32, %arg1: i32) -> (i32, i32) {
    %c0_i32 = arith.constant 0 : i32
    %c0_i32_0 = arith.constant 0 : i32
    %c0_i32_1 = arith.constant 0 : i32
    return %c0_i32, %c0_i32_0 : i32, i32
  }
  func.func @transform_4(%arg0: i32, %arg1: i32) -> (i32, i32) {
    %c0_i32 = arith.constant 0 : i32
    %c0_i32_0 = arith.constant 0 : i32
    %c0_i32_1 = arith.constant 0 : i32
    return %c0_i32, %c0_i32_0 : i32, i32
  }
  func.func @transform_5(%arg0: i32, %arg1: i32) -> (i32, i32) {
    %c0_i32 = arith.constant 0 : i32
    %c0_i32_0 = arith.constant 0 : i32
    %c0_i32_1 = arith.constant 0 : i32
    return %c0_i32, %c0_i32_0 : i32, i32
  }
  func.func @transform_6(%arg0: i32, %arg1: i32) -> (i32, i32) {
    %c0_i32 = arith.constant 0 : i32
    %c0_i32_0 = arith.constant 0 : i32
    %c0_i32_1 = arith.constant 0 : i32
    return %c0_i32, %c0_i32_0 : i32, i32
  }
  func.func @transform_7(%arg0: i32, %arg1: i32) -> (i32, i32) {
    %c0_i32 = arith.constant 0 : i32
    %c0_i32_0 = arith.constant 0 : i32
    %c0_i32_1 = arith.constant 0 : i32
    return %c0_i32, %c0_i32_0 : i32, i32
  }
  func.func @transform_8(%arg0: i32, %arg1: i32) -> (i32, i32) {
    %c0_i32 = arith.constant 0 : i32
    %c0_i32_0 = arith.constant 0 : i32
    %c0_i32_1 = arith.constant 0 : i32
    return %c0_i32, %c0_i32_0 : i32, i32
  }
  func.func @transform_9(%arg0: i32, %arg1: i32) -> (i32, i32) {
    %c0_i32 = arith.constant 0 : i32
    %c0_i32_0 = arith.constant 0 : i32
    %c0_i32_1 = arith.constant 0 : i32
    return %c0_i32, %c0_i32_0 : i32, i32
  }
  func.func @transform_10(%arg0: i32, %arg1: i32) -> (i32, i32) {
    %c0_i32 = arith.constant 0 : i32
    %c0_i32_0 = arith.constant 0 : i32
    %c0_i32_1 = arith.constant 0 : i32
    return %c0_i32, %c0_i32_0 : i32, i32
  }
  func.func @transform_11(%arg0: i32, %arg1: i32) -> (i32, i32) {
    %c0_i32 = arith.constant 0 : i32
    %c0_i32_0 = arith.constant 0 : i32
    %c0_i32_1 = arith.constant 0 : i32
    return %c0_i32, %c0_i32_0 : i32, i32
  }
  func.func @transform_12(%arg0: i32, %arg1: i32) -> (i32, i32) {
    %c0_i32 = arith.constant 0 : i32
    %c0_i32_0 = arith.constant 0 : i32
    %c0_i32_1 = arith.constant 0 : i32
    return %c0_i32, %c0_i32_0 : i32, i32
  }
  func.func @transform_13(%arg0: i32, %arg1: i32) -> (i32, i32) {
    %c0_i32 = arith.constant 0 : i32
    %c0_i32_0 = arith.constant 0 : i32
    return %c0_i32, %arg1 : i32, i32
  }
  func.func @transform_14(%arg0: i32, %arg1: i32) -> (i32, i32) {
    %c0_i32 = arith.constant 0 : i32
    %c0_i32_0 = arith.constant 0 : i32
    return %c0_i32, %arg1 : i32, i32
  }
  func.func @transform_15(%arg0: i32, %arg1: i32) -> (i32, i32) {
    %c0_i32 = arith.constant 0 : i32
    %c0_i32_0 = arith.constant 0 : i32
    return %arg1, %c0_i32 : i32, i32
  }
  func.func @transform_16(%arg0: i32, %arg1: i32) -> (i32, i32) {
    %c0_i32 = arith.constant 0 : i32
    %c0_i32_0 = arith.constant 0 : i32
    %c0_i32_1 = arith.constant 0 : i32
    return %c0_i32, %c0_i32_0 : i32, i32
  }
  func.func @transform_17(%arg0: i32, %arg1: i32) -> (i32, i32, i32) {
    %c0_i32 = arith.constant 0 : i32
    %c0_i32_0 = arith.constant 0 : i32
    %c0_i32_1 = arith.constant 0 : i32
    return %arg0, %c0_i32, %c0_i32_0 : i32, i32, i32
  }
}

</mosaic_0001>

<bundles_post_ra>
// kernel: tpu_custom_call.1
= control target key start
LH: loop header
LB: loop body
LE: loop exit
PB: predicated region body
PF: predicated region fallthrough
CT: control target
= control target key end

     0   :  { %s3731_s0 = inlined_call_operand.vmem [shape: f32[2,8,32], index: 0, kind: input, shape index: {}]   ;;  %s3732_s1 = inlined_call_operand.hbm [shape: f32[1,32], index: 1, kind: input, shape index: {}]   ;;  %s3733_s2 = inlined_call_operand.vmem [shape: f32[1,32], index: 2, kind: input, shape index: {}]   ;;  %s3734_s3 = inlined_call_operand.vmem [shape: bf16[32,32], index: 3, kind: input, shape index: {}]   ;;  %s3735_s4 = inlined_call_operand.vmem [shape: f32[1,32], index: 4, kind: input, shape index: {}]   ;;  %s3736_s5 = inlined_call_operand.vmem [shape: bf16[32,32], index: 5, kind: input, shape index: {}]   ;;  %s3737_s6 = inlined_call_operand.vmem [shape: f32[1,32], index: 6, kind: input, shape index: {}]   ;;  %s3738_s7 = inlined_call_operand.vmem [shape: bf16[32,32], index: 7, kind: input, shape index: {}]   ;;  %s3739_s8 = inlined_call_operand.vmem [shape: f32[1,32], index: 8, kind: input, shape index: {}]   ;;  %s3740_s9 = inlined_call_operand.vmem [shape: bf16[32,32], index: 9, kind: input, shape index: {}]   ;;  %s3741_s10 = inlined_call_operand.vmem [shape: f32[1,32], index: 10, kind: input, shape index: {}]   ;;  %s3742_s11 = inlined_call_operand.vmem [shape: f32[1,32], index: 11, kind: input, shape index: {}]   ;;  %s3743_s12 = inlined_call_operand.vmem [shape: f32[1,32], index: 12, kind: input, shape index: {}]   ;;  %s3744_s13 = inlined_call_operand.hbm [shape: bf16[32,128], index: 13, kind: input, shape index: {}]   ;;  %s3745_s14 = inlined_call_operand.vmem [shape: f32[1,128], index: 14, kind: input, shape index: {}]   ;;  %s3746_s15 = inlined_call_operand.vmem [shape: bf16[128,32], index: 15, kind: input, shape index: {}]   ;;  %s3747_s16 = inlined_call_operand.vmem [shape: f32[1,32], index: 16, kind: input, shape index: {}]   ;;  %s3748_s17 = inlined_call_operand.hbm [shape: f32[2,8,32], index: 17, kind: output, shape index: {}]  }
   0x1   :  { %3758 = sst [smem:[#allocation21_spill]] %s3731_s0 }
   0x2   :  { %3759 = sst [smem:[#allocation22_spill]] %s3732_s1 }
   0x3   :  { %3760 = sst [smem:[#allocation23_spill]] %s3733_s2 }
   0x4   :  { %22 = vsyncpa [#allocation5], 0 }
   0x5   :  { %23 = vsyncpa [#allocation8], 0 }
   0x6   :  { %24 = vsyncpa [#allocation6], 0 }
   0x7   :  { %26 = vsyncpa [#allocation6 + $0x1], 0  ;;  %s3225_s24 = smov 0   ;;  %s3227_s25 = smov 0  }
   0x8   :  { %s3229_s26 = smov 0   ;;  %s3231_s27 = smov 0  }
   0x9   :  { %s3233_s28 = smov 0   ;;  %s3235_s29 = smov 0  }
   0xa LB: > { %3761 = sst [smem:[#allocation13_spill]] %s3100_s24  ;;  %s2663_s0 = sadd.s32 4294967295, %s3120_s29   ;;  %s3120_s29 = sphi %s3235_s29, %s32_s29   ;;  %s3116_s28 = sphi %s3233_s28, %s3783_s28   ;;  %s3112_s27 = sphi %s3231_s27, %s3782_s27   ;;  %s3108_s26 = sphi %s3229_s26, %s3781_s26   ;;  %s3104_s25 = sphi %s3227_s25, %s3785_s25   ;;  %s3100_s24 = sphi %s3225_s24, %s3784_s24  }
   0xb   : > { %3762 = sst [smem:[#allocation14_spill]] %s3108_s26  ;;  %s2664_s30 = sadd.s32 4294967294, %s3120_s29  }
   0xc   : > { %3763 = sst [smem:[#allocation15_spill]] %s3116_s28  ;;  %s44_s18 = sadd.s32 1, %s3116_s28 }
   0xd   : > { %3764 = sst [smem:[#allocation16_spill]] %s3120_s29  ;;  %s428_s19 = sadd.s32 1, %s3108_s26 }
   0xe   : > { %p46_p0 = scmp.ge.s32.totalorder %s44_s18, 2  ;;  %p438_p1 = scmp.ne.s32.totalorder %s3108_s26, %s3104_s25 }
   0xf   : > { %p439_p2 = scmp.eq.s32.totalorder %s2663_s0, 1  ;;  %p444_p3 = scmp.ne.s32.totalorder %s3104_s25, %s3100_s24 }
  0x10   : > { %s3787_s18 = smov (%p46_p0, %s44_s18), 0  ;;  %p445_p5 = scmp.eq.s32.totalorder %s2664_s30, 1 }
  0x11   : > { %3765 = sst [smem:[#allocation17_spill]] %s3787_s18  ;;  %p3265_p4 = por %p439_p2, %p438_p1 }
  0x12   : > { %s425_s20 = ssub.s32 %s3116_s28, %s3787_s18  ;;  %p2665_p6 = scmp.ge.s32.totalorder %s3120_s29, 1 }
  0x13   : > { %s3766_s1 = scalar_select %p3265_p4, 1, 0 }
  0x14   : > { %p426_p7 = scmp.eq.s32.totalorder %s425_s20, 0  ;;  %p3272_p8 = por %p445_p5, %p444_p3 }
  0x15   : > { %3767 = sst [smem:[#allocation18_spill]] %s3766_s1  ;;  %p452_p9 = scmp.lt.s32.totalorder %s3120_s29, 3 }
  0x16   : > { %s3768_s21 = scalar_select %p3272_p8, 1, 0 }
  0x17   : > { %s3278_s22 = scalar_select %p426_p7, %s3108_s26, %s428_s19  }
  0x18   : > { %3769 = sst [smem:[#allocation19_spill]] %s3768_s21  ;;  %p3280_p10 = pnand %p2665_p6, %p452_p9 }
  0x19   : > { %3770 = sst [smem:[#allocation20_spill]] %s3278_s22  ;;  %p3284_p11 = scmp.eq.s32.totalorder %s2663_s0, 0 }
  0x1a   : > { %s3773_s28 = sld [smem:[#allocation22_spill]]  ;;  %p2793_p12 = pneg %p3280_p10 }
  0x1b   : > { %s3122_s21 = smov [#allocation4]   ;;  %s510_s29 = sshll.u32 %s3744_s13, 4  ;;  %s511_s29 = int_to_ptr.hbm [resolvable:$true] %s510_s29 }
  0x1c   : > { %s466_s19 = sshll.u32 %s3122_s21, 4  ;;  %p2794_p13 = pnand %p3284_p11, %p2793_p12  ;;  %s467_s19 = int_to_ptr.vmem [resolvable:$true] %s466_s19 }
  0x1d   : > { %s3123_s0 = smov [#allocation7]   ;;  %s3124_s18 = smov 64  }
  0x1e   : > { %s512_s1 = sshll.u32 %s3123_s0, 4  ;;  %s3125_s30 = smov 4   ;;  %s513_s1 = int_to_ptr.vmem [resolvable:$true] %s512_s1 }
  0x1f   : > { %2799 = dma.hbm_to_vmem [thread:$0]  (!%p2794_p13), %s511_s29, 256, %s513_s1, [#allocation8], %s3124_s18, %s3124_s18, %s3125_s30  }
  0x20   : > { %s464_s20 = sshll.u32 %s3773_s28, 4  ;;  %553 = sbr.rel (%p3280_p10) target bundleno = 2924 (0xb6c), region = 88  ;;  %s465_s20 = int_to_ptr.hbm [resolvable:$true] %s464_s20 }
  0x21   : > { %2796 = dma.hbm_to_vmem [thread:$0]  (!%p2794_p13), %s465_s20, 16, %s467_s19, [#allocation5]  }
  0x25   : > { %3087 = dma.done.wait (%p3284_p11), [#allocation5], 16  }
  0x26   : > { %3089 = vsyncadd (%p3284_p11), [#allocation5], 4294967280 }
  0x27   : > { %3091 = dma.done.wait (%p3284_p11), [#allocation8], 256  }
  0x28   : > { %3093 = vsyncadd (%p3284_p11), [#allocation8], 4294967040  ;;  %p618_p0 = scmp.lt.s32.totalorder %s3112_s27, 1  ;;  %s3774_s21 = sld [smem:[#allocation21_spill]]  ;;  %vm639_vm0 = vcmask 261120   ;;  %v3126_v2 = vmov 32.0  }
  0x29   : > { %2949 = vrcp.f32 %v3126_v2  ;;  %v2766_v14 = vld [vmem:[%s3734_s3 + $0x8] sm:$0xff]  ;;  %v2765_v16 = vld [vmem:[%s3734_s3] sm:$0xff]  ;;  %s3775_s2 = sld [smem:[#allocation23_spill]]  ;;  %s3127_s0 = smov 104   ;;  %v3130_v51 = vmov 1983009808  }
  0x2a   : > { %s619_s26 = scalar_select %p618_p0, %s3112_s27, 1  ;;  %v2770_v15 = vld [vmem:[%s3738_s7 + $0x8] sm:$0xff]  ;;  %707 = vmatpush.bf16.msra.mxu1 %v2766_v14  ;;  %v2769_v17 = vld [vmem:[%s3738_s7] sm:$0xff]  ;;  %v797_v52 = vunpack.c.l.s4 %v3130_v51  ;;  %vm792_vm5 = vcmask 1047556   ;;  %v3131_v57 = vmov 1934713408  }
  0x2b   : > { %773 = vmatpush.bf16.msra.mxu2 %v2770_v15  ;;  %v2768_v18 = vld [vmem:[%s3736_s5 + $0x8] sm:$0xff]  ;;  %v2767_v21 = vld [vmem:[%s3736_s5] sm:$0xff]  ;;  %s3128_s18 = smov 112   ;;  %v821_v58 = vunpack.c.l.s4 %v3131_v57  ;;  %vm1457_vm6 = vcmask 1043456   ;;  %vm1453_vm7 = vcmask 64512   ;;  %s3133_s24 = smov 16  }
  0x2c   : > { %s2675_s28 = sshll.u32 %s619_s26, 3  ;;  %v2939_v29 = vld [vmem:[#allocation4] ss:$0 sm:$0xff]  ;;  %v2941_v36 = vld [vmem:[%s3735_s4] ss:$0 sm:$0xff]  ;;  %v3360_v55 = vunpack.c.0.s8 %v797_v52  ;;  %s3134_s23 = smov 8  }
  0x2d   : > { %v2943_v42 = vld [vmem:[%s3737_s6] ss:$0 sm:$0xff]  ;;  %v3365_v2 = vunpack.c.0.s8 %v821_v58  ;;  %vm2313_vm9 = vcmask 130048   ;;  %vm2315_vm10 = vcmask 195584   ;;  %vm2388_vm14 = vcmask 257024   ;;  %s2762_s30 = sshll.u32 %s3112_s27, 3 }
  0x2e   : > { %s3313_s22 = scalar_lea.vmem %s3774_s21, %s2675_s28  ;;  %708 = vmatpush.bf16.msra.mxu1 %v2765_v16  ;;  %s3129_s28 = smov 120  }
  0x2f   : > { %v636_v0 = vld [vmem:[%s3313_s22] sm:$0xff]  ;;  %v2950_v3 = vpop.eup %2949  ;;  %774 = vmatpush.bf16.msra.mxu2 %v2769_v17  ;;  %s3132_s21 = smov 24  }
  0x30   : > { %v640_v1 = vsel %vm639_vm0, %v636_v0, 0.0  ;;  %v644_v4 = vmul.f32 32.0, %v2950_v3  ;;  %vm648_vm1 = vweird.f32 %v2950_v3  ;;  %v2940_v32 = vld [vmem:[%s3775_s2] ss:$0 sm:$0xff] }
  0x31   : > { %641 = vadd.xlane.f32.xlu0 %v640_v1 }
  0x32   : > { %v645_v5 = vsub.f32 1.0, %v644_v4  ;;  %740 = vmatpush.bf16.msrb.mxu1 %v2768_v18 }
  0x34   : > { %v646_v6 = vmul.f32 %v2950_v3, %v645_v5 }
  0x36   : > { %v647_v7 = vadd.f32 %v2950_v3, %v646_v6  ;;  %741 = vmatpush.bf16.msrb.mxu1 %v2767_v21 }
  0x38   : > { %v3317_v8 = vsel %vm648_vm1, %v2950_v3, %v647_v7 }
  0xa4   : > { %v642_v9 = vpop.xlane.xlu0 %641 }
  0xa5   : > { %v650_v10 = vmul.f32 %v3317_v8, %v642_v9 }
  0xa7   : > { %v651_v11 = vsub.f32 %v636_v0, %v650_v10 }
  0xa9   : > { %v652_v12 = vmul.f32 %v651_v11, %v651_v11 }
  0xab   : > { %v653_v13 = vsel %vm639_vm0, %v652_v12, 0.0 }
  0xac   : > { %654 = vadd.xlane.f32.xlu0 %v653_v13 }
 0x11f   : > { %v655_v19 = vpop.xlane.xlu0 %654 }
 0x120   : > { %v656_v20 = vmul.f32 %v655_v19, %v3317_v8 }
 0x122   : > { %v657_v22 = vadd.f32 1e-05, %v656_v20 }
 0x124   : > { %2951 = vrsqrt.f32 %v657_v22  ;;  %vm664_vm3 = vweird.f32 %v657_v22 }
 0x12a   : > { %v2952_v23 = vpop.eup %2951 }
 0x12b   : > { %v659_v24 = vmul.f32 %v2952_v23, %v657_v22  ;;  %vm665_vm2 = vweird.f32 %v2952_v23 }
 0x12c   : > { %vm666_vm4 = vmor %vm664_vm3, %vm665_vm2 }
 0x12d   : > { %v660_v25 = vmul.f32 %v2952_v23, %v659_v24 }
 0x12f   : > { %v661_v26 = vmul.f32 0.5, %v660_v25 }
 0x131   : > { %v662_v27 = vsub.f32 1.5, %v661_v26 }
 0x133   : > { %v663_v28 = vmul.f32 %v2952_v23, %v662_v27 }
 0x135   : > { %v667_v30 = vsel %vm666_vm4, %v2952_v23, %v663_v28 }
 0x136   : > { %v668_v31 = vmul.f32 %v667_v30, %v651_v11 }
 0x138   : > { %v672_v33 = vmul.f32 %v2939_v29, %v668_v31 }
 0x13a   : > { %v676_v34 = vadd.f32 %v2940_v32, %v672_v33 }
 0x13c   : > { %v677_v35 = vpack.c.bf16 %v676_v34, %v676_v34 }
 0x13e   : > { %2684 = vmatmul.msk.bf16.vlgmr.msra.gmra.mxu1 %vm639_vm0, %v677_v35  ;;  %2702 = vmatmul.msk.bf16.vlgmr.msra.gmra.mxu2 %vm639_vm0, %v677_v35 }
 0x14e   : > { %2693 = vmatmul.msk.bf16.vlgmr.msrb.gmra.mxu1 %vm639_vm0, %v677_v35 }
 0x1bb   : > { %v710_v37 = vpop.f32.mrf.mxu1 }
 0x1bc   : > { %v711_v38 = vadd.f32 %v2941_v36, %v710_v37 }
 0x1be   : > { %v780_v39 = vmul.f32 0.35355338, %v711_v38 }
 0x1c0   : > { %788 = vrot.lane.b32.xlu2 %v780_v39, %s3127_s0  ;;  %785 = vrot.lane.b32.xlu0 %v780_v39, %s3128_s18  ;;  %v794_v53 = vrot.slane %v780_v39, 4 }
 0x1c1   : > { %v3351_v40 = vpop.f32.mrf.mxu2 }
 0x1c3   : > { %v712_v41 = vpop.f32.mrf.mxu1 }
 0x1c9   : > { %v778_v43 = vpop.f32.mrf.mxu2 }
 0x1cb   : > { %v743_v44 = vpop.f32.mrf.mxu1 }
 0x1cc   : > { %v744_v45 = vadd.f32 %v2943_v42, %v743_v44 }
 0x1ce   : > { %860 = vrot.lane.b32.xlu2 %v744_v45, %s3128_s18  ;;  %v2872_v46 = vpack.i.bf16 %v780_v39, %v744_v45  ;;  %v868_v1 = vrot.slane %v744_v45, 4 }
 0x1d0   : > { %2873 = vrot.lane.b32.xlu1 %v2872_v46, %s3129_s28 }
 0x1d3   : > { %v745_v47 = vpop.f32.mrf.mxu1 }
 0x1d8   : > { %863 = vrot.lane.b32.xlu1 %v744_v45, %s3127_s0 }
 0x21a   : > { %v789_v50 = vpop.permute.xlu2 %788 }
 0x21b   : > { %v804_v61 = vrot.slane %v789_v50, 4 }
 0x228   : > { %v861_v0 = vpop.permute.xlu2 %860 }
 0x229   : > { %v866_v7 = vrot.slane %v861_v0, 4  ;;  %v869_v9 = vsel %vm792_vm5, %v861_v0, %v868_v1 }
 0x22a   : > { %v877_v21 = vperm.slane %v869_v9, %v3360_v55 }
 0x22b   : > { %v867_v24 = vsel %vm792_vm5, %v866_v7, %v744_v45 }
 0x22c   : > { %v873_v35 = vperm.slane %v867_v24, %v3360_v55 }
 0x232   : > { %v786_v48 = vpop.permute.xlu0 %785 }
 0x233   : > { %v791_v49 = vrot.slane %v786_v48, 4  ;;  %v795_v56 = vsel %vm792_vm5, %v786_v48, %v794_v53 }
 0x234   : > { %v803_v62 = vperm.slane %v795_v56, %v3360_v55 }
 0x235   : > { %v793_v54 = vsel %vm792_vm5, %v791_v49, %v780_v39  ;;  %v904_v39 = vrot.slane %v877_v21, 4 }
 0x236   : > { %v799_v59 = vperm.slane %v793_v54, %v3360_v55  ;;  %v830_v10 = vrot.slane %v803_v62, 4 }
 0x238   : > { %v818_v5 = vrot.slane %v799_v59, 4 }
 0x242   : > { %v2874_v60 = vpop.permute.xlu1 %2873 }
 0x243   : > { %v2876_v63 = vunpack.i.h.bf16 %v2874_v60  ;;  %v2875_v12 = vunpack.i.l.bf16 %v2874_v60 }
 0x245   : > { %v806_v3 = vrot.slane %v2876_v63, 4  ;;  %v805_v4 = vsel %vm792_vm5, %v804_v61, %v2876_v63  ;;  %v880_v26 = vrot.slane %v2875_v12, 4 }
 0x246   : > { %v811_v6 = vperm.slane %v805_v4, %v3360_v55 }
 0x247   : > { %v807_v11 = vsel %vm792_vm5, %v789_v50, %v806_v3 }
 0x248   : > { %v815_v13 = vperm.slane %v807_v11, %v3360_v55  ;;  %v816_v14 = vrot.slane %v811_v6, 4  ;;  %v819_v15 = vsel %vm792_vm5, %v811_v6, %v818_v5 }
 0x249   : > { %v827_v16 = vperm.slane %v819_v15, %v3365_v2 }
 0x24a   : > { %v817_v17 = vsel %vm792_vm5, %v816_v14, %v799_v59  ;;  %v828_v18 = vrot.slane %v815_v13, 4  ;;  %v831_v19 = vsel %vm792_vm5, %v815_v13, %v830_v10  ;;  %v864_v20 = vpop.permute.xlu1 %863 }
 0x24b   : > { %v823_v22 = vperm.slane %v817_v17, %v3365_v2  ;;  %v839_v23 = vperm.slane %v831_v19, %v3365_v2  ;;  %v878_v27 = vrot.slane %v864_v20, 4  ;;  %v842_v29 = vrot.slane %v827_v16, 4 }
 0x24c   : > { %v829_v25 = vsel %vm792_vm5, %v828_v18, %v803_v62  ;;  %v881_v34 = vsel %vm792_vm5, %v864_v20, %v880_v26  ;;  %v850_v41 = vpack.c.bf16 %v827_v16, %v827_v16 }
 0x24d   : > { %v835_v28 = vperm.slane %v829_v25, %v3365_v2  ;;  %v846_v30 = vrot.slane %v839_v23, 4  ;;  %v840_v31 = vrot.slane %v823_v22, 4  ;;  %v854_v32 = vpack.c.bf16 %v839_v23, %v839_v23 }
 0x24e   : > { %v879_v33 = vsel %vm792_vm5, %v878_v27, %v2875_v12  ;;  %v848_v44 = vpack.c.bf16 %v823_v22, %v823_v22  ;;  %v889_v46 = vperm.slane %v881_v34, %v3360_v55  ;;  %v843_v49 = vsel %vm792_vm5, 0.0, %v842_v29 }
 0x24f   : > { %v844_v36 = vrot.slane %v835_v28, 4  ;;  %v847_v37 = vsel %vm792_vm5, 0.0, %v846_v30  ;;  %v852_v38 = vpack.c.bf16 %v835_v28, %v835_v28  ;;  %v1011_v42 = vrot.slane %v854_v32, 4 }
 0x250   : > { %v885_v43 = vperm.slane %v879_v33, %v3360_v55  ;;  %v841_v48 = vsel %vm792_vm5, 0.0, %v840_v31  ;;  %v855_v50 = vpack.c.bf16 %v847_v37, %v847_v37  ;;  %v902_v52 = vrot.slane %v889_v46, 4 }
 0x251   : > { %v1004_v45 = vrot.slane %v852_v38, 4  ;;  %v845_v47 = vsel %vm792_vm5, 0.0, %v844_v36  ;;  %v905_v53 = vsel %vm792_vm5, %v889_v46, %v904_v39  ;;  %v1012_v59 = vsel %vm792_vm5, %v1011_v42, %v850_v41 }
 0x252   : > { %v890_v51 = vrot.slane %v885_v43, 4  ;;  %v853_v54 = vpack.c.bf16 %v845_v47, %v845_v47  ;;  %v913_v57 = vperm.slane %v905_v53, %v3365_v2  ;;  %v849_v60 = vpack.c.bf16 %v841_v48, %v841_v48 }
 0x253   : > { %v1006_v56 = vsel %vm792_vm5, %v1004_v45, %v848_v44  ;;  %v851_v61 = vpack.c.bf16 %v843_v49, %v843_v49  ;;  %v903_v62 = vsel %vm792_vm5, %v902_v52, %v877_v21  ;;  %v1031_v0 = vrot.slane %v855_v50, 4  ;;  %v2942_v49 = vld [vmem:[%s3739_s8] ss:$0 sm:$0xff] }
 0x254   : > { %v891_v58 = vsel %vm792_vm5, %v890_v51, %v873_v35  ;;  %v920_v1 = vrot.slane %v913_v57, 4  ;;  %v909_v3 = vperm.slane %v903_v62, %v3365_v2  ;;  %v1016_v4 = vperm.slane %v1012_v59, %v3360_v55 }
 0x255   : > { %v897_v63 = vperm.slane %v891_v58, %v3365_v2  ;;  %v928_v5 = vpack.c.bf16 %v913_v57, %v913_v57  ;;  %v1010_v7 = vperm.slane %v1006_v56, %v3360_v55  ;;  %v1025_v9 = vrot.slane %v853_v54, 4 }
 0x256   : > { %v921_v10 = vsel %vm792_vm5, 0.0, %v920_v1  ;;  %v918_v11 = vrot.slane %v909_v3, 4  ;;  %v926_v12 = vpack.c.bf16 %v909_v3, %v909_v3  ;;  %v1017_v16 = vrot.slane %v1016_v4, 4 }
 0x257   : > { %v914_v6 = vrot.slane %v897_v63, 4  ;;  %v922_v13 = vpack.c.bf16 %v897_v63, %v897_v63  ;;  %v929_v14 = vpack.c.bf16 %v921_v10, %v921_v10  ;;  %v1026_v17 = vsel %vm792_vm5, %v1025_v9, %v849_v60 }
 0x258   : > { %v919_v18 = vsel %vm792_vm5, 0.0, %v918_v11  ;;  %v1030_v20 = vperm.slane %v1026_v17, %v3360_v55  ;;  %v1032_v21 = vsel %vm792_vm5, %v1031_v0, %v851_v61  ;;  %v892_v22 = vrot.slane %v873_v35, 4 }
 0x259   : > { %v915_v15 = vsel %vm792_vm5, 0.0, %v914_v6  ;;  %2877 = vxpose.binary.xlu1.c.b16.start.end [1/2] (short) (narrow) %v929_v14, %v928_v5, 16  ;;  %v927_v23 = vpack.c.bf16 %v919_v18, %v919_v18  ;;  %v1018_v24 = vsel %vm792_vm5, %v1017_v16, %v1010_v7  ;;  %v1036_v25 = vperm.slane %v1032_v21, %v3360_v55 }
 0x25a   : > { %v923_v19 = vpack.c.bf16 %v915_v15, %v915_v15  ;;  %v3410_v26 = vperm.slane %v1018_v24, %v3365_v2  ;;  %v893_v27 = vsel %vm792_vm5, %v885_v43, %v892_v22  ;;  %v3443_v50 = vadd.f32 %v2942_v49, %v3351_v40 }
 0x25b   : > { %2880 = vxpose.binary.xlu2.c.b16.start.end [1/2] (short) (narrow) %v927_v23, %v926_v12, 16  ;;  %v1037_v28 = vrot.slane %v1036_v25, 4  ;;  %v901_v31 = vperm.slane %v893_v27, %v3365_v2 }
 0x25c   : > { %2883 = vxpose.binary.xlu0.c.b16.start.end [1/2] (short) (narrow) %v923_v19, %v922_v13, 16  ;;  %v1023_v29 = vrot.slane %v3410_v26, 4  ;;  %v1048_v33 = vshrl.u32 %v3410_v26, 16 }
 0x25d   : > { %v1038_v30 = vsel %vm792_vm5, %v1037_v28, %v1030_v20  ;;  %v916_v38 = vrot.slane %v901_v31, 4  ;;  %v924_v47 = vpack.c.bf16 %v901_v31, %v901_v31 }
 0x25e   : > { %v3417_v32 = vperm.slane %v1038_v30, %v3365_v2  ;;  %v3423_v35 = vsel %vm792_vm5, 0, %v1023_v29 }
 0x25f   : > { %v1054_v43 = vshrl.u32 %v3423_v35, 16  ;;  %v917_v46 = vsel %vm792_vm5, 0.0, %v916_v38 }
 0x260   : > { %v1047_v34 = vpack.i.b16 %v3417_v32, %v3410_v26  ;;  %v1043_v36 = vrot.slane %v3417_v32, 4  ;;  %v1049_v37 = vshrl.u32 %v3417_v32, 16  ;;  %v925_v48 = vpack.c.bf16 %v917_v46, %v917_v46 }
 0x262   : > { %v3428_v39 = vsel %vm792_vm5, 0, %v1043_v36  ;;  %v3430_v41 = vpack.i.b16 %v1049_v37, %v1048_v33 }
 0x263   : > { %v1053_v42 = vpack.i.b16 %v3428_v39, %v3423_v35  ;;  %v1055_v44 = vshrl.u32 %v3428_v39, 16 }
 0x265   : > { %v3436_v45 = vpack.i.b16 %v1055_v44, %v1054_v43 }
 0x26b   : > { %2886 = vxpose.binary.xlu2.c.b16.start.end [1/2] (short) (narrow) %v925_v48, %v924_v47, 16 }
 0x2ca   : > { %937 = vrot.lane.b32.xlu0 %v3443_v50, %s3127_s0  ;;  %s615_s0 = sand.u32 1, %s3104_s25  }
 0x2cb   : > { %s2530_s27 = scalar_lea.sflag [#allocation6], %s615_s0 }
 0x2d4   : > { %934 = vrot.lane.b32.xlu2 %v3443_v50, %s3128_s18  ;;  %s2674_s18 = sshll.u32 %s615_s0, 3 }
 0x2fc   : > { %v2881_v51 = vpop.trf.xlu2 }
 0x2fd   : > { %v1185_v61 = vrot.slane %v2881_v51, 4 }
 0x304   : > { %v2882_v52 = vpop.trf.xlu2 }
 0x305   : > { %v2878_v53 = vpop.trf.xlu1  ;;  %v1213_v1 = vrot.slane %v2882_v52, 4 }
 0x306   : > { %v1191_v56 = vrot.slane %v2878_v53, 4 }
 0x308   : > { %v2884_v54 = vpop.trf.xlu0 }
 0x309   : > { %v1186_v40 = vsel %vm792_vm5, %v1185_v61, %v2884_v54 }
 0x30a   : > { %v1190_v3 = vperm.slane %v1186_v40, %v3360_v55 }
 0x30c   : > { %v2887_v57 = vpop.trf.xlu2  ;;  %v1199_v20 = vrot.slane %v1190_v3, 4 }
 0x30d   : > { %v1192_v58 = vsel %vm792_vm5, %v1191_v56, %v2887_v57  ;;  %v2879_v60 = vpop.trf.xlu1 }
 0x30e   : > { %v1196_v59 = vperm.slane %v1192_v58, %v3360_v55  ;;  %v1219_v62 = vrot.slane %v2879_v60, 4 }
 0x310   : > { %v1197_v63 = vrot.slane %v1196_v59, 4  ;;  %v2885_v0 = vpop.trf.xlu0  ;;  %v1200_v22 = vsel %vm792_vm5, %v1196_v59, %v1199_v20 }
 0x311   : > { %v1214_v5 = vsel %vm792_vm5, %v1213_v1, %v2885_v0  ;;  %v1208_v24 = vperm.slane %v1200_v22, %v3365_v2 }
 0x312   : > { %v1198_v7 = vsel %vm792_vm5, %v1197_v63, %v1190_v3  ;;  %v1218_v10 = vperm.slane %v1214_v5, %v3360_v55 }
 0x313   : > { %v1204_v12 = vperm.slane %v1198_v7, %v3365_v2  ;;  %v1261_v27 = vshrl.u32 %v1208_v24, 16  ;;  %v1211_v47 = vrot.slane %v1208_v24, 4 }
 0x314   : > { %v2888_v4 = vpop.trf.xlu2  ;;  %v1227_v19 = vrot.slane %v1218_v10, 4 }
 0x315   : > { %v1220_v6 = vsel %vm792_vm5, %v1219_v62, %v2888_v4  ;;  %v1245_v15 = vshrl.u32 %v1204_v12, 16  ;;  %v1209_v31 = vrot.slane %v1204_v12, 4  ;;  %v1212_v49 = vsel %vm792_vm5, 0, %v1211_v47 }
 0x316   : > { %v1224_v9 = vperm.slane %v1220_v6, %v3360_v55  ;;  %v1269_v52 = vshrl.u32 %v1212_v49, 16 }
 0x317   : > { %v1210_v36 = vsel %vm792_vm5, 0, %v1209_v31 }
 0x318   : > { %v1225_v11 = vrot.slane %v1224_v9, 4  ;;  %v1228_v21 = vsel %vm792_vm5, %v1224_v9, %v1227_v19  ;;  %v1253_v38 = vshrl.u32 %v1210_v36, 16 }
 0x319   : > { %v1236_v23 = vperm.slane %v1228_v21, %v3365_v2 }
 0x31a   : > { %v1226_v13 = vsel %vm792_vm5, %v1225_v11, %v1218_v10 }
 0x31b   : > { %v1232_v14 = vperm.slane %v1226_v13, %v3365_v2  ;;  %v1262_v25 = vshrl.u32 %v1236_v23, 16  ;;  %v1259_v28 = vpack.i.b16 %v1236_v23, %v1208_v24  ;;  %v1239_v46 = vrot.slane %v1236_v23, 4 }
 0x31d   : > { %v1246_v16 = vshrl.u32 %v1232_v14, 16  ;;  %v1243_v17 = vpack.i.b16 %v1232_v14, %v1204_v12  ;;  %v1263_v29 = vpack.i.b16 %v1262_v25, %v1261_v27  ;;  %v1237_v30 = vrot.slane %v1232_v14, 4 }
 0x31e   : > { %v1240_v48 = vsel %vm792_vm5, 0, %v1239_v46 }
 0x31f   : > { %v1247_v18 = vpack.i.b16 %v1246_v16, %v1245_v15  ;;  %v1238_v33 = vsel %vm792_vm5, 0, %v1237_v30  ;;  %v1270_v51 = vshrl.u32 %v1240_v48, 16  ;;  %v1267_v53 = vpack.i.b16 %v1240_v48, %v1212_v49 }
 0x320   : > { %v1254_v37 = vshrl.u32 %v1238_v33, 16  ;;  %v1251_v43 = vpack.i.b16 %v1238_v33, %v1210_v36 }
 0x321   : > { %2889 = vxpose.binary.xlu1.c.b16.start.end [1/2] (short) (narrow) %v1247_v18, %v1243_v17, 16  ;;  %v1271_v54 = vpack.i.b16 %v1270_v51, %v1269_v52 }
 0x322   : > { %v1255_v44 = vpack.i.b16 %v1254_v37, %v1253_v38 }
 0x32e   : > { %v935_v38 = vpop.permute.xlu2 %934 }
 0x32f   : > { %v940_v47 = vrot.slane %v935_v38, 4 }
 0x331   : > { %2892 = vxpose.binary.xlu1.c.b16.start.end [1/2] (short) (narrow) %v1263_v29, %v1259_v28, 16  ;;  %v941_v49 = vsel %vm792_vm5, %v940_v47, %v3443_v50 }
 0x33c   : > { %v938_v46 = vpop.permute.xlu0 %937 }
 0x33d   : > { %v952_v26 = vrot.slane %v938_v46, 4 }
 0x341   : > { %2895 = vxpose.binary.xlu1.c.b16.start.end [1/2] (short) (narrow) %v1255_v44, %v1251_v43, 16  ;;  %v942_v44 = vrot.slane %v3443_v50, 4 }
 0x343   : > { %v943_v48 = vsel %vm792_vm5, %v935_v38, %v942_v44 }
 0x344   : > { %v951_v32 = vperm.slane %v943_v48, %v3360_v55 }
 0x351   : > { %2898 = vxpose.binary.xlu1.c.b16.start.end [1/2] (short) (narrow) %v1271_v54, %v1267_v53, 16  ;;  %v978_v53 = vrot.slane %v951_v32, 4 }
 0x3ab   : > { %931 = vrot.lane.b32.xlu1 %v3443_v50, %s3129_s28  ;;  %s2540_s28 = scalar_lea.hbm %s3748_s17, %s2762_s30 }
 0x3ac   : > { %s2544_s20 = sshll.u32 %s2540_s28, 4  ;;  %s2545_s20 = int_to_ptr.hbm [resolvable:$true] %s2544_s20 }
 0x3ad   : > { %s3048_s19 = sshra.s32 %s2545_s20, 4  ;;  %s3049_s19 = int_to_ptr.hbm [resolvable:$true] %s3048_s19 }
 0x3ae   : > { %s3050_s26 = scalar_lea.hbm %s3049_s19, 8  ;;  %p3055_p5 = scmp.lt.s32.totalorder %s3049_s19, %s3748_s17 }
 0x3af   : > { %p3051_p1 = scmp.ne.s32.totalorder %s3049_s19, %s3050_s26 }
 0x3b1   : > { %p3052_p2 = pnand %p3051_p1, %p3265_p4 }
 0x3b3   : > { %p3053_p3 = pneg %p3052_p2 }
 0x3cd   : > { %v2890_v56 = vpop.trf.xlu1 }
 0x3d5   : > { %v2891_v57 = vpop.trf.xlu1 }
 0x3dd   : > { %v2893_v58 = vpop.trf.xlu1 }
 0x3de   : > { %v1401_v40 = vrot.slane %v2893_v58, 4 }
 0x3e0   : > { %v1402_v0 = vsel %vm792_vm5, %v1401_v40, %v2890_v56 }
 0x3e1   : > { %v1406_v4 = vperm.slane %v1402_v0, %v3360_v55 }
 0x3e5   : > { %v2894_v59 = vpop.trf.xlu1 }
 0x3e6   : > { %v1421_v6 = vrot.slane %v2894_v59, 4 }
 0x3e8   : > { %v1422_v11 = vsel %vm792_vm5, %v1421_v6, %v2891_v57 }
 0x3e9   : > { %v1426_v15 = vperm.slane %v1422_v11, %v3360_v55 }
 0x3ed   : > { %v2896_v60 = vpop.trf.xlu1 }
 0x3f5   : > { %v2897_v61 = vpop.trf.xlu1 }
 0x3fd   : > { %v2899_v62 = vpop.trf.xlu1 }
 0x3fe   : > { %v1407_v63 = vrot.slane %v2899_v62, 4 }
 0x400   : > { %v1408_v1 = vsel %vm792_vm5, %v1407_v63, %v2896_v60 }
 0x401   : > { %v1412_v3 = vperm.slane %v1408_v1, %v3360_v55 }
 0x403   : > { %v1413_v5 = vrot.slane %v1412_v3, 4 }
 0x405   : > { %v2900_v7 = vpop.trf.xlu1  ;;  %v1414_v9 = vsel %vm792_vm5, %v1413_v5, %v1406_v4 }
 0x406   : > { %v1427_v10 = vrot.slane %v2900_v7, 4  ;;  %v1418_v13 = vperm.slane %v1414_v9, %v3365_v2 }
 0x408   : > { %v1428_v12 = vsel %vm792_vm5, %v1427_v10, %v2897_v61  ;;  %v1419_v17 = vrot.slane %v1418_v13, 4  ;;  %v1444_v20 = vshrl.u32 %v1418_v13, 16 }
 0x409   : > { %v1432_v14 = vperm.slane %v1428_v12, %v3360_v55 }
 0x40a   : > { %v1420_v23 = vsel %vm792_vm5, 0, %v1419_v17 }
 0x40b   : > { %v1433_v16 = vrot.slane %v1432_v14, 4  ;;  %v1450_v30 = vshrl.u32 %v1420_v23, 16 }
 0x40d   : > { %v1434_v18 = vsel %vm792_vm5, %v1433_v16, %v1426_v15 }
 0x40e   : > { %v1438_v19 = vperm.slane %v1434_v18, %v3365_v2 }
 0x410   : > { %v1443_v21 = vpack.i.b16 %v1438_v19, %v1418_v13  ;;  %v1445_v22 = vshrl.u32 %v1438_v19, 16  ;;  %v1439_v24 = vrot.slane %v1438_v19, 4 }
 0x412   : > { %v1459_v25 = vsel %vm1457_vm6, %v1443_v21, 0  ;;  %v1446_v27 = vpack.i.b16 %v1445_v22, %v1444_v20  ;;  %v1440_v28 = vsel %vm792_vm5, 0, %v1439_v24 }
 0x413   : > { %1468 = vmatpush.bf16.msra.mxu3 %v1459_v25  ;;  %v1449_v29 = vpack.i.b16 %v1440_v28, %v1420_v23  ;;  %v1451_v31 = vshrl.u32 %v1440_v28, 16 }
 0x414   : > { %v1478_v33 = vsel %vm1457_vm6, %v1446_v27, 0 }
 0x415   : > { %v1497_v36 = vsel %vm1457_vm6, %v1449_v29, 0  ;;  %v1452_v37 = vpack.i.b16 %v1451_v31, %v1450_v30 }
 0x416   : > { %2703 = vmatmul.msk.bf16.vlgmr.msra.gmra.mxu3 %vm1453_vm7, %v1047_v34  ;;  %1506 = vmatpush.bf16.msra.mxu0 %v1497_v36 }
 0x417   : > { %1487 = vmatpush.bf16.msrb.mxu3 %v1478_v33  ;;  %v1516_v43 = vsel %vm1457_vm6, %v1452_v37, 0 }
 0x418   : > { %1525 = vmatpush.bf16.msra.mxu1 %v1516_v43 }
 0x419   : > { %2705 = vmatmul.msk.bf16.vlgmr.msra.gmra.mxu0 %vm1453_vm7, %v1053_v42  ;;  %v947_v42 = vperm.slane %v941_v49, %v3360_v55 }
 0x41b   : > { %2706 = vmatmul.msk.bf16.vlgmr.msra.gmra.mxu1 %vm1453_vm7, %v3436_v45  ;;  %v966_v30 = vrot.slane %v947_v42, 4 }
 0x41d   : > { %v932_v34 = vpop.permute.xlu1 %931 }
 0x41e   : > { %v953_v51 = vsel %vm792_vm5, %v952_v26, %v932_v34  ;;  %v954_v52 = vrot.slane %v932_v34, 4 }
 0x41f   : > { %v959_v35 = vperm.slane %v953_v51, %v3360_v55 }
 0x420   : > { %v955_v39 = vsel %vm792_vm5, %v938_v46, %v954_v52 }
 0x421   : > { %v963_v54 = vperm.slane %v955_v39, %v3360_v55  ;;  %v964_v45 = vrot.slane %v959_v35, 4  ;;  %v967_v31 = vsel %vm792_vm5, %v959_v35, %v966_v30 }
 0x422   : > { %v975_v33 = vperm.slane %v967_v31, %v3365_v2 }
 0x423   : > { %v965_v56 = vsel %vm792_vm5, %v964_v45, %v947_v42  ;;  %v976_v57 = vrot.slane %v963_v54, 4  ;;  %v979_v58 = vsel %vm792_vm5, %v963_v54, %v978_v53 }
 0x424   : > { %v987_v50 = vperm.slane %v979_v58, %v3365_v2  ;;  %v971_v59 = vperm.slane %v965_v56, %v3365_v2  ;;  %v990_v36 = vrot.slane %v975_v33, 4  ;;  %v998_v38 = vpack.c.bf16 %v975_v33, %v975_v33 }
 0x425   : > { %v977_v60 = vsel %vm792_vm5, %v976_v57, %v951_v32 }
 0x426   : > { %2704 = vmatmul.msk.bf16.vlgmr.msrb.gmra.mxu3 %vm1453_vm7, %v3430_v41  ;;  %v994_v61 = vrot.slane %v987_v50, 4  ;;  %v988_v40 = vrot.slane %v971_v59, 4  ;;  %v983_v62 = vperm.slane %v977_v60, %v3365_v2  ;;  %v1002_v1 = vpack.c.bf16 %v987_v50, %v987_v50 }
 0x427   : > { %v996_v6 = vpack.c.bf16 %v971_v59, %v971_v59  ;;  %v1531_v41 = vlaneseq  ;;  %v991_v37 = vsel %vm792_vm5, 0.0, %v990_v36 }
 0x428   : > { %v995_v63 = vsel %vm792_vm5, 0.0, %v994_v61  ;;  %v989_v0 = vsel %vm792_vm5, 0.0, %v988_v40  ;;  %v992_v5 = vrot.slane %v983_v62, 4  ;;  %v1000_v9 = vpack.c.bf16 %v983_v62, %v983_v62 }
 0x429   : > { %v1003_v3 = vpack.c.bf16 %v995_v63, %v995_v63  ;;  %v997_v4 = vpack.c.bf16 %v989_v0, %v989_v0  ;;  %v1532_v11 = vshrl.u32 %v1531_v41, 7  ;;  %v1534_v12 = vand.u32 127, %v1531_v41 }
 0x42a   : > { %v993_v7 = vsel %vm792_vm5, 0.0, %v992_v5  ;;  %v999_v43 = vpack.c.bf16 %v991_v37, %v991_v37 }
 0x42b   : > { %2907 = vxpose.binary.xlu0.c.b16.start.end [1/2] (short) (narrow) %v1003_v3, %v1002_v1, 16  ;;  %v1001_v10 = vpack.c.bf16 %v993_v7, %v993_v7  ;;  %vm1535_vm8 = vcmp.ge.s32.totalorder %v1532_v11, %v1534_v12 }
 0x42c   : > { %2904 = vxpose.binary.xlu2.c.b16.start.end [1/2] (short) (narrow) %v997_v4, %v996_v6, 16 }
 0x42d   : > { %2901 = vxpose.binary.xlu1.c.b16.start.end [1/2] (short) (narrow) %v1001_v10, %v1000_v9, 16 }
 0x496   : > { %v1508_v13 = vpop.f32.mrf.mxu0 }
 0x497   : > { %v1540_v15 = vsel %vm1535_vm8, %v1508_v13, -1e+30 }
 0x498   : > { %v1527_v14 = vpop.f32.mrf.mxu1  ;;  %v1548_v19 = vsel %vm1453_vm7, %v1540_v15, -inf }
 0x499   : > { %v1541_v16 = vsel %vm1535_vm8, %v1527_v14, -1e+30  ;;  %v1470_v17 = vpop.f32.mrf.mxu3 }
 0x49a   : > { %v1551_v18 = vsel %vm1453_vm7, %v1541_v16, -inf  ;;  %v3525_v21 = vsel %vm1535_vm8, %v1470_v17, -1e+30 }
 0x49b   : > { %v1542_v24 = vsel %vm1453_vm7, %v3525_v21, -inf }
 0x49c   : > { %1552 = vmax.xlane.f32.xlu0 %v1551_v18 }
 0x49d   : > { %1549 = vmax.xlane.f32.xlu2 %v1548_v19 }
 0x49e   : > { %v1510_v20 = vpop.f32.mrf.mxu0 }
 0x4a0   : > { %v1529_v22 = vpop.f32.mrf.mxu1 }
 0x4a1   : > { %v1472_v23 = vpop.f32.mrf.mxu3 }
 0x4a4   : > { %1543 = vmax.xlane.f32.xlu0 %v1542_v24 }
 0x4a9   : > { %v1489_v25 = vpop.f32.mrf.mxu3 }
 0x4aa   : > { %v1539_v27 = vsel %vm1535_vm8, %v1489_v25, -1e+30 }
 0x4ab   : > { %v1545_v28 = vsel %vm1453_vm7, %v1539_v27, -inf }
 0x4ac   : > { %1546 = vmax.xlane.f32.xlu2 %v1545_v28 }
 0x4b1   : > { %v1491_v29 = vpop.f32.mrf.mxu3 }
 0x4cd   : > { %v2905_v46 = vpop.trf.xlu2 }
 0x4d5   : > { %2910 = vxpose.binary.xlu2.c.b16.start.end [1/2] (short) (narrow) %v999_v43, %v998_v38, 16  ;;  %v2906_v48 = vpop.trf.xlu2 }
 0x4d7   : > { %v2908_v44 = vpop.trf.xlu0 }
 0x4d8   : > { %v1724_v40 = vrot.slane %v2908_v44, 4 }
 0x4d9   : > { %v2902_v50 = vpop.trf.xlu1 }
 0x4da   : > { %v1718_v59 = vrot.slane %v2902_v50, 4 }
 0x4dc   : > { %v1719_v60 = vsel %vm792_vm5, %v1718_v59, %v2905_v46 }
 0x4dd   : > { %v1723_v62 = vperm.slane %v1719_v60, %v3360_v55 }
 0x4df   : > { %v2909_v47 = vpop.trf.xlu0  ;;  %v1732_v3 = vrot.slane %v1723_v62, 4 }
 0x4e0   : > { %v1752_v9 = vrot.slane %v2909_v47, 4 }
 0x4e1   : > { %v2903_v61 = vpop.trf.xlu1 }
 0x4e2   : > { %v1746_v63 = vrot.slane %v2903_v61, 4 }
 0x4e4   : > { %v1747_v5 = vsel %vm792_vm5, %v1746_v63, %v2906_v48 }
 0x4e5   : > { %v1751_v10 = vperm.slane %v1747_v5, %v3360_v55 }
 0x50f   : > { %v1553_v26 = vpop.xlane.xlu0 %1552 }
 0x510   : > { %v1557_v32 = vsub.f32 %v1541_v16, %v1553_v26  ;;  %v1550_v49 = vpop.xlane.xlu2 %1549 }
 0x511   : > { %v1556_v45 = vsub.f32 %v1540_v15, %v1550_v49  ;;  %v1760_v15 = vrot.slane %v1751_v10, 4 }
 0x512   : > { %v1564_v34 = vmul.f32 1.442695, %v1557_v32 }
 0x513   : > { %v1562_v56 = vmul.f32 1.442695, %v1556_v45 }
 0x514   : > { %2953 = vpow2.f32 %v1564_v34 }
 0x51a   : > { %v3534_v51 = vpop.eup %2953 }
 0x51b   : > { %v1575_v52 = vsel %vm1453_vm7, %v3534_v51, 0.0 }
 0x51c   : > { %1576 = vadd.xlane.f32.xlu1 %v1575_v52 }
 0x51f   : > { %v1547_v35 = vpop.xlane.xlu2 %1546 }
 0x520   : > { %v1555_v39 = vsub.f32 %v1539_v27, %v1547_v35 }
 0x522   : > { %v1560_v42 = vmul.f32 1.442695, %v1555_v39 }
 0x524   : > { %2955 = vpow2.f32 %v1560_v42 }
 0x525   : > { %2957 = vpow2.f32 %v1562_v56 }
 0x52a   : > { %v3538_v53 = vpop.eup %2955 }
 0x52b   : > { %v1569_v54 = vsel %vm1453_vm7, %v3538_v53, 0.0  ;;  %v3542_v57 = vpop.eup %2957 }
 0x52c   : > { %1570 = vadd.xlane.f32.xlu1 %v1569_v54  ;;  %v1572_v58 = vsel %vm1453_vm7, %v3542_v57, 0.0 }
 0x546   : > { %1573 = vadd.xlane.f32.xlu2 %v1572_v58 }
 0x576   : > { %v2911_v0 = vpop.trf.xlu2 }
 0x577   : > { %v1725_v1 = vsel %vm792_vm5, %v1724_v40, %v2911_v0 }
 0x578   : > { %v1729_v4 = vperm.slane %v1725_v1, %v3360_v55 }
 0x57a   : > { %v1730_v6 = vrot.slane %v1729_v4, 4  ;;  %v1733_v7 = vsel %vm792_vm5, %v1729_v4, %v1732_v3  ;;  %v1544_v3 = vpop.xlane.xlu0 %1543 }
 0x57b   : > { %v1741_v11 = vperm.slane %v1733_v7, %v3365_v2  ;;  %v1554_v4 = vsub.f32 %v3525_v21, %v1544_v3 }
 0x57c   : > { %v1731_v41 = vsel %vm792_vm5, %v1730_v6, %v1723_v62 }
 0x57d   : > { %v3556_v12 = vperm.slane %v1731_v41, %v3365_v2  ;;  %v1744_v17 = vrot.slane %v1741_v11, 4  ;;  %v1794_v24 = vshrl.u32 %v1741_v11, 16  ;;  %v1558_v5 = vmul.f32 1.442695, %v1554_v4 }
 0x57e   : > { %v2912_v13 = vpop.trf.xlu2 }
 0x57f   : > { %v1753_v14 = vsel %vm792_vm5, %v1752_v9, %v2912_v13  ;;  %v1742_v20 = vrot.slane %v3556_v12, 4  ;;  %v1745_v25 = vsel %vm792_vm5, 0, %v1744_v17  ;;  %v1778_v33 = vshrl.u32 %v3556_v12, 16 }
 0x580   : > { %v1757_v16 = vperm.slane %v1753_v14, %v3360_v55  ;;  %v1802_v46 = vshrl.u32 %v1745_v25, 16 }
 0x581   : > { %v1743_v31 = vsel %vm792_vm5, 0, %v1742_v20 }
 0x582   : > { %v1758_v18 = vrot.slane %v1757_v16, 4  ;;  %v1761_v19 = vsel %vm792_vm5, %v1757_v16, %v1760_v15  ;;  %v1786_v32 = vshrl.u32 %v1743_v31, 16 }
 0x583   : > { %v1769_v22 = vperm.slane %v1761_v19, %v3365_v2 }
 0x584   : > { %v1759_v23 = vsel %vm792_vm5, %v1758_v18, %v1751_v10 }
 0x585   : > { %v1765_v27 = vperm.slane %v1759_v23, %v3365_v2  ;;  %v1792_v28 = vpack.i.b16 %v1769_v22, %v1741_v11  ;;  %v1795_v29 = vshrl.u32 %v1769_v22, 16  ;;  %v1772_v30 = vrot.slane %v1769_v22, 4 }
 0x587   : > { %v1796_v36 = vpack.i.b16 %v1795_v29, %v1794_v24  ;;  %v1773_v37 = vsel %vm792_vm5, 0, %v1772_v30  ;;  %v1770_v38 = vrot.slane %v1765_v27, 4  ;;  %v1776_v43 = vpack.i.b16 %v1765_v27, %v3556_v12 }
 0x588   : > { %v1800_v44 = vpack.i.b16 %v1773_v37, %v1745_v25  ;;  %v1803_v47 = vshrl.u32 %v1773_v37, 16  ;;  %v1779_v48 = vshrl.u32 %v1765_v27, 16 }
 0x589   : > { %2919 = vxpose.binary.xlu2.c.b16.start.end [1/2] (short) (narrow) %v1796_v36, %v1792_v28, 16  ;;  %v1771_v26 = vsel %vm792_vm5, 0, %v1770_v38 }
 0x58a   : > { %v1804_v34 = vpack.i.b16 %v1803_v47, %v1802_v46  ;;  %v1784_v49 = vpack.i.b16 %v1771_v26, %v1743_v31  ;;  %v1787_v52 = vshrl.u32 %v1771_v26, 16  ;;  %v1780_v35 = vpack.i.b16 %v1779_v48, %v1778_v33 }
 0x58c   : > { %2913 = vxpose.binary.xlu0.c.b16.start.end [1/2] (short) (narrow) %v1804_v34, %v1800_v44, 16  ;;  %v1788_v39 = vpack.i.b16 %v1787_v52, %v1786_v32 }
 0x58e   : > { %2916 = vxpose.binary.xlu1.c.b16.start.end [1/2] (short) (narrow) %v1788_v39, %v1784_v49, 16 }
 0x58f   : > { %v1577_v42 = vpop.xlane.xlu1 %1576 }
 0x590   : > { %2959 = vrcp.f32 %v1577_v42 }
 0x596   : > { %v2960_v54 = vpop.eup %2959 }
 0x597   : > { %v1585_v45 = vmul.f32 %v2960_v54, %v3534_v51 }
 0x599   : > { %v1589_v56 = vpack.c.bf16 %v1585_v45, %v1585_v45 }
 0x59b   : > { %v2047_v58 = vsel %vm1453_vm7, %v1589_v56, 0 }
 0x59c   : > { %2056 = vmatpush.bf16.xpose.msrb.mxu1 %v2047_v58 }
 0x59f   : > { %v1571_v50 = vpop.xlane.xlu1 %1570 }
 0x5a0   : > { %2961 = vrcp.f32 %v1571_v50 }
 0x5a6   : > { %v2962_v59 = vpop.eup %2961 }
 0x5a7   : > { %v1583_v60 = vmul.f32 %v2962_v59, %v3538_v53 }
 0x5a9   : > { %v1587_v61 = vpack.c.bf16 %v1583_v60, %v1583_v60 }
 0x5ab   : > { %v2009_v40 = vsel %vm1453_vm7, %v1587_v61, 0 }
 0x5ac   : > { %2018 = vmatpush.bf16.xpose.msra.mxu3 %v2009_v40 }
 0x5b9   : > { %v1574_v62 = vpop.xlane.xlu2 %1573 }
 0x5ba   : > { %2963 = vrcp.f32 %v1574_v62 }
 0x5bb   : > { %2965 = vpow2.f32 %v1558_v5 }
 0x5c0   : > { %v2964_v63 = vpop.eup %2963 }
 0x5c1   : > { %v1584_v0 = vmul.f32 %v2964_v63, %v3542_v57  ;;  %v2966_v6 = vpop.eup %2965 }
 0x5c2   : > { %v1566_v53 = vsel %vm1453_vm7, %v2966_v6, 0.0 }
 0x5c3   : > { %v1588_v1 = vpack.c.bf16 %v1584_v0, %v1584_v0 }
 0x5c5   : > { %v2028_v51 = vsel %vm1453_vm7, %v1588_v1, 0 }
 0x5c6   : > { %2037 = vmatpush.bf16.xpose.msrb.mxu0 %v2028_v51 }
 0x5fd   : > { %1567 = vadd.xlane.f32.xlu0 %v1566_v53 }
 0x626   : > { %2922 = vxpose.binary.xlu0.c.b16.start.end [1/2] (short) (narrow) %v1780_v35, %v1776_v43, 16 }
 0x62a   : > { %v2920_v21 = vpop.trf.xlu2 }
 0x62b   : > { %v1934_v16 = vrot.slane %v2920_v21, 4 }
 0x632   : > { %v2921_v25 = vpop.trf.xlu2 }
 0x633   : > { %v1954_v29 = vrot.slane %v2921_v25, 4 }
 0x638   : > { %v2914_v7 = vpop.trf.xlu0 }
 0x639   : > { %v1940_v14 = vrot.slane %v2914_v7, 4 }
 0x63a   : > { %v2917_v13 = vpop.trf.xlu1 }
 0x63b   : > { %v1941_v15 = vsel %vm792_vm5, %v1940_v14, %v2917_v13 }
 0x63c   : > { %v1945_v17 = vperm.slane %v1941_v15, %v3360_v55 }
 0x63e   : > { %v1946_v23 = vrot.slane %v1945_v17, 4 }
 0x640   : > { %v2915_v9 = vpop.trf.xlu0 }
 0x641   : > { %v1960_v18 = vrot.slane %v2915_v9, 4 }
 0x642   : > { %v2918_v19 = vpop.trf.xlu1 }
 0x643   : > { %v1961_v27 = vsel %vm792_vm5, %v1960_v18, %v2918_v19 }
 0x644   : > { %v1965_v30 = vperm.slane %v1961_v27, %v3360_v55 }
 0x646   : > { %v1966_v37 = vrot.slane %v1965_v30, 4 }
 0x670   : > { %v1568_v10 = vpop.xlane.xlu0 %1567 }
 0x671   : > { %2967 = vrcp.f32 %v1568_v10 }
 0x677   : > { %v2968_v41 = vpop.eup %2967 }
 0x678   : > { %v1582_v57 = vmul.f32 %v2968_v41, %v2966_v6 }
 0x67a   : > { %v1586_v11 = vpack.c.bf16 %v1582_v57, %v1582_v57 }
 0x67c   : > { %v1990_v12 = vsel %vm1453_vm7, %v1586_v11, 0 }
 0x67d   : > { %1999 = vmatpush.bf16.xpose.msrb.mxu2 %v1990_v12 }
 0x6d2   : > { %v2923_v20 = vpop.trf.xlu0 }
 0x6d3   : > { %v1935_v22 = vsel %vm792_vm5, %v1934_v16, %v2923_v20 }
 0x6d4   : > { %v1939_v24 = vperm.slane %v1935_v22, %v3360_v55 }
 0x6d6   : > { %v1947_v28 = vsel %vm792_vm5, %v1946_v23, %v1939_v24 }
 0x6d7   : > { %v1951_v31 = vperm.slane %v1947_v28, %v3365_v2 }
 0x6d9   : > { %v1952_v43 = vrot.slane %v1951_v31, 4  ;;  %v1977_v47 = vshrl.u32 %v1951_v31, 16 }
 0x6da   : > { %v2924_v33 = vpop.trf.xlu0 }
 0x6db   : > { %v1955_v36 = vsel %vm792_vm5, %v1954_v29, %v2924_v33  ;;  %v1953_v32 = vsel %vm792_vm5, 0, %v1952_v43 }
 0x6dc   : > { %v1959_v38 = vperm.slane %v1955_v36, %v3360_v55  ;;  %v1983_v39 = vshrl.u32 %v1953_v32, 16 }
 0x6de   : > { %v1967_v44 = vsel %vm792_vm5, %v1966_v37, %v1959_v38 }
 0x6df   : > { %v1971_v46 = vperm.slane %v1967_v44, %v3365_v2 }
 0x6e1   : > { %v1978_v48 = vshrl.u32 %v1971_v46, 16  ;;  %v1976_v26 = vpack.i.b16 %v1971_v46, %v1951_v31  ;;  %v1972_v34 = vrot.slane %v1971_v46, 4 }
 0x6e3   : > { %2707 = vmatmul.msk.bf16.vlgmr.msrb.gmra.mxu2 %vm1453_vm7, %v1976_v26  ;;  %v1979_v49 = vpack.i.b16 %v1978_v48, %v1977_v47  ;;  %v1973_v52 = vsel %vm792_vm5, 0, %v1972_v34 }
 0x6e4   : > { %v1982_v35 = vpack.i.b16 %v1973_v52, %v1953_v32  ;;  %v1984_v42 = vshrl.u32 %v1973_v52, 16 }
 0x6e5   : > { %2708 = vmatmul.msk.bf16.vlgmr.msra.gmra.mxu3 %vm1453_vm7, %v1979_v49 }
 0x6e6   : > { %v1985_v54 = vpack.i.b16 %v1984_v42, %v1983_v39  ;;  %2709 = vmatmul.msk.bf16.vlgmr.msrb.gmra.mxu0 %vm1453_vm7, %v1982_v35 }
 0x6e8   : > { %2710 = vmatmul.msk.bf16.vlgmr.msrb.gmra.mxu1 %vm1453_vm7, %v1985_v54 }
 0x763   : > { %v2039_v45 = vpop.f32.mrf.mxu0 }
 0x765   : > { %v2058_v56 = vpop.f32.mrf.mxu1 }
 0x766   : > { %v2001_v58 = vpop.f32.mrf.mxu2 }
 0x767   : > { %v2925_v50 = vpack.i.bf16 %v2001_v58, %v2039_v45 }
 0x768   : > { %v2020_v59 = vpop.f32.mrf.mxu3 }
 0x769   : > { %v2932_v60 = vpack.i.bf16 %v2020_v59, %v2058_v56  ;;  %2926 = vxpose.xlu2.b32.start.end [1/1] (short) (narrow) %v2925_v50, 8 }
 0x76b   : > { %2933 = vxpose.xlu0.b32.start.end [1/1] (short) (narrow) %v2932_v60, 8  ;;  %v2041_v61 = vpop.f32.mrf.mxu0 }
 0x76d   : > { %v2060_v40 = vpop.f32.mrf.mxu1 }
 0x76e   : > { %v2003_v62 = vpop.f32.mrf.mxu2 }
 0x770   : > { %v2022_v63 = vpop.f32.mrf.mxu3 }
 0x802   : > { %v2927_v0 = vpop.trf.xlu2 }
 0x803   : > { %v2931_v1 = vunpack.i.h.bf16 %v2927_v0  ;;  %v2928_v51 = vunpack.i.l.bf16 %v2927_v0 }
 0x805   : > { %v2192_v3 = vrot.slane %v2931_v1, 4  ;;  %v2190_v4 = vrot.slane %v2928_v51, 4 }
 0x807   : > { %v2191_v5 = vsel %vm792_vm5, %v2190_v4, %v2931_v1  ;;  %v2193_v6 = vsel %vm792_vm5, %v2928_v51, %v2192_v3 }
 0x808   : > { %v2197_v10 = vperm.slane %v2191_v5, %v3360_v55  ;;  %v2201_v41 = vperm.slane %v2193_v6, %v3360_v55  ;;  %v2771_v6 = vld [vmem:[%s3740_s9] sm:$0xff] }
 0x80a   : > { %v2216_v14 = vrot.slane %v2197_v10, 4  ;;  %v2228_v21 = vrot.slane %v2201_v41, 4 }
 0x80f   : > { %v2934_v53 = vpop.trf.xlu0 }
 0x810   : > { %v2938_v7 = vunpack.i.h.bf16 %v2934_v53  ;;  %v2935_v9 = vunpack.i.l.bf16 %v2934_v53 }
 0x812   : > { %v2204_v57 = vrot.slane %v2938_v7, 4  ;;  %v2202_v11 = vrot.slane %v2935_v9, 4 }
 0x814   : > { %v2203_v12 = vsel %vm792_vm5, %v2202_v11, %v2938_v7  ;;  %v2205_v13 = vsel %vm792_vm5, %v2935_v9, %v2204_v57 }
 0x815   : > { %v2209_v15 = vperm.slane %v2203_v12, %v3360_v55  ;;  %v2213_v16 = vperm.slane %v2205_v13, %v3360_v55  ;;  %v2944_v12 = vld [vmem:[%s3741_s10] ss:$0 sm:$0xff] }
 0x817   : > { %v2214_v17 = vrot.slane %v2209_v15, 4  ;;  %v2217_v18 = vsel %vm792_vm5, %v2209_v15, %v2216_v14  ;;  %v2226_v19 = vrot.slane %v2213_v16, 4  ;;  %v2229_v20 = vsel %vm792_vm5, %v2213_v16, %v2228_v21  ;;  %v2973_v21 = vld [vmem:[%s3313_s22] sm:$0xff] }
 0x818   : > { %v2225_v22 = vperm.slane %v2217_v18, %v3365_v2  ;;  %v2237_v23 = vperm.slane %v2229_v20, %v3365_v2 }
 0x819   : > { %v2215_v24 = vsel %vm792_vm5, %v2214_v17, %v2197_v10  ;;  %v2227_v25 = vsel %vm792_vm5, %v2226_v19, %v2201_v41 }
 0x81a   : > { %v2221_v27 = vperm.slane %v2215_v24, %v3365_v2  ;;  %v2233_v28 = vperm.slane %v2227_v25, %v3365_v2  ;;  %v2240_v29 = vrot.slane %v2225_v22, 4  ;;  %v2244_v30 = vrot.slane %v2237_v23, 4  ;;  %v2774_v24 = vld [vmem:[#allocation7 + $0x8] sm:$0xff] }
 0x81b   : > { %2422 = vmatpush.bf16.msrb.mxu3 %v2774_v24 }
 0x81c   : > { %v2241_v31 = vsel %vm792_vm5, 0.0, %v2240_v29  ;;  %v2238_v33 = vrot.slane %v2221_v27, 4  ;;  %v2242_v36 = vrot.slane %v2233_v28, 4  ;;  %v2245_v37 = vsel %vm792_vm5, 0.0, %v2244_v30 }
 0x81d   : > { %v2246_v38 = vsel %vm792_vm5, %v2240_v29, %v2221_v27  ;;  %v2251_v43 = vrot.slane %v2241_v31, 4  ;;  %v2257_v44 = vsel %vm792_vm5, %v2244_v30, %v2233_v28  ;;  %v2262_v46 = vrot.slane %v2245_v37, 4  ;;  %v2773_v28 = vld [vmem:[#allocation7] sm:$0xff]  ;;  %v2782_v30 = vld [vmem:[%s3746_s15 + $0x38] sm:$0xff] }
 0x81e   : > { %v2239_v47 = vsel %vm792_vm5, 0.0, %v2238_v33  ;;  %v2243_v48 = vsel %vm792_vm5, 0.0, %v2242_v36  ;;  %v2250_v26 = vperm.slane %v2246_v38, %v3360_v55  ;;  %v2261_v32 = vperm.slane %v2257_v44, %v3360_v55  ;;  %2504 = vmatpush.bf16.msra.mxu0 %v2782_v30 }
 0x81f   : > { %v2252_v34 = vsel %vm792_vm5, %v2251_v43, %v2239_v47  ;;  %v2263_v49 = vsel %vm792_vm5, %v2262_v46, %v2243_v48  ;;  %2423 = vmatpush.bf16.msrb.mxu3 %v2773_v28  ;;  %v2946_v46 = vld [vmem:[%s3743_s12] ss:$0 sm:$0xff] }
 0x820   : > { %v2256_v52 = vperm.slane %v2252_v34, %v3360_v55  ;;  %v2267_v35 = vperm.slane %v2263_v49, %v3360_v55  ;;  %v2270_v39 = vrot.slane %v2250_v26, 4  ;;  %v2282_v42 = vrot.slane %v2261_v32, 4  ;;  %v2781_v49 = vld [vmem:[%s3746_s15 + $0x30] sm:$0xff] }
 0x822   : > { %v2271_v54 = vsel %vm792_vm5, %v2256_v52, %v2270_v39  ;;  %v2283_v45 = vsel %vm792_vm5, %v2267_v35, %v2282_v42  ;;  %v2268_v56 = vrot.slane %v2256_v52, 4  ;;  %v2280_v58 = vrot.slane %v2267_v35, 4  ;;  %2505 = vmatpush.bf16.msra.mxu0 %v2781_v49  ;;  %v2780_v52 = vld [vmem:[%s3746_s15 + $0x28] sm:$0xff]  ;;  %v2779_v35 = vld [vmem:[%s3746_s15 + $0x20] sm:$0xff]  ;;  %v2778_v39 = vld [vmem:[%s3746_s15 + $0x18] sm:$0xff] }
 0x823   : > { %v2279_v50 = vperm.slane %v2271_v54, %v3365_v2  ;;  %v2291_v59 = vperm.slane %v2283_v45, %v3365_v2  ;;  %v2777_v42 = vld [vmem:[%s3746_s15 + $0x10] sm:$0xff]  ;;  %v2776_v54 = vld [vmem:[%s3746_s15 + $0x8] sm:$0xff]  ;;  %v2775_v45 = vld [vmem:[%s3746_s15] sm:$0xff] }
 0x824   : > { %v2269_v60 = vsel %vm792_vm5, %v2268_v56, %v2250_v26  ;;  %v2281_v61 = vsel %vm792_vm5, %v2280_v58, %v2261_v32  ;;  %v2947_v56 = vld [vmem:[%s3745_s14] ss:$0 sm:$0xff] }
 0x825   : > { %v2298_v40 = vrot.slane %v2279_v50, 4  ;;  %v2296_v62 = vrot.slane %v2291_v59, 4  ;;  %v2275_v55 = vperm.slane %v2269_v60, %v3365_v2  ;;  %v2287_v63 = vperm.slane %v2281_v61, %v3365_v2  ;;  %v2772_v2 = vld [vmem:[%s3740_s9 + $0x8] sm:$0xff] }
 0x826   : > { %2347 = vmatpush.bf16.msra.mxu2 %v2772_v2  ;;  %2506 = vmatpush.bf16.msra.mxu0 %v2780_v52 }
 0x827   : > { %v2299_v0 = vsel %vm792_vm5, %v2291_v59, %v2298_v40  ;;  %v2297_v1 = vsel %vm792_vm5, %v2296_v62, %v2279_v50  ;;  %v2292_v51 = vrot.slane %v2287_v63, 4  ;;  %v2294_v3 = vrot.slane %v2275_v55, 4 }
 0x828   : > { %2309 = vrot.lane.b32.xlu0 %v2299_v0, %s3132_s21  ;;  %2305 = vrot.lane.b32.xlu2 %v2297_v1, %s3133_s24  ;;  %s617_s24 = scalar_lea.vmem [#allocation9], %s2674_s18  ;;  %s3054_s18 = scalar_lea.hbm %s3748_s17, 16 }
 0x829   : > { %v2295_v4 = vsel %vm792_vm5, %v2287_v63, %v2294_v3  ;;  %v2293_v5 = vsel %vm792_vm5, %v2292_v51, %v2275_v55  ;;  %p3056_p6 = scmp.lt.s32.totalorder %s3054_s18, %s3050_s26 }
 0x82a   : > { %2301 = vrot.lane.b32.xlu1 %v2295_v4, %s3134_s23  ;;  %2348 = vmatpush.bf16.msra.mxu2 %v2771_v6  ;;  %v2948_v6 = vld [vmem:[%s3747_s16] ss:$0 sm:$0xff]  ;;  %s2542_s23 = sshll.u32 %s617_s24, 4  ;;  %s2543_s23 = int_to_ptr.vmem [resolvable:$true] %s2542_s23 }
 0x82b   : > { %2507 = vmatpush.bf16.msra.mxu0 %v2779_v35  ;;  %p3057_p7 = por %p3056_p6, %p3055_p5 }
 0x82d   : > { %p3058_p9 = pnand %p3057_p7, %p3053_p3 }
 0x82f   : > { %2508 = vmatpush.bf16.msra.mxu0 %v2778_v39 }
 0x833   : > { %2509 = vmatpush.bf16.msra.mxu0 %v2777_v42 }
 0x837   : > { %2510 = vmatpush.bf16.msra.mxu0 %v2776_v54 }
 0x83b   : > { %2511 = vmatpush.bf16.msra.mxu0 %v2775_v45 }
 0x882   : > { %v2306_v7 = vpop.permute.xlu2 %2305 }
 0x89a   : > { %v2310_v10 = vpop.permute.xlu0 %2309 }
 0x89c   : > { %v2302_v53 = vpop.permute.xlu1 %2301 }
 0x89d   : > { %v2312_v9 = vsel %vm1453_vm7, %v2293_v5, %v2302_v53 }
 0x89e   : > { %v2314_v41 = vsel %vm2313_vm9, %v2312_v9, %v2306_v7 }
 0x89f   : > { %v2316_v57 = vsel %vm2315_vm10, %v2314_v41, %v2310_v10 }
 0x8a0   : > { %v2317_v11 = vpack.c.bf16 %v2316_v57, %v2316_v57 }
 0x8a2   : > { %2719 = vmatmul.msk.bf16.vlgmr.msra.gmra.mxu2 %vm639_vm0, %v2317_v11 }
 0x925   : > { %v2350_v13 = vpop.f32.mrf.mxu2 }
 0x926   : > { %v2351_v14 = vadd.f32 %v2944_v12, %v2350_v13 }
 0x928   : > { %v2354_v15 = vadd.f32 %v2973_v21, %v2351_v14 }
 0x92a   : > { %2390 = vst.msk [vmem:[#allocation3] sm:$0xff] %vm639_vm0, %v2354_v15  ;;  %v2357_v16 = vsel %vm639_vm0, %v2354_v15, 0.0 }
 0x92b   : > { %2358 = vadd.xlane.f32.xlu1 %v2357_v16 }
 0x92d   : > { %v2352_v17 = vpop.f32.mrf.mxu2 }
 0x931   : > { %v2438_v4 = vld [vmem:[#allocation3] sm:$0xff] }
 0x99e   : > { %v2359_v18 = vpop.xlane.xlu1 %2358 }
 0x99f   : > { %v2360_v19 = vmul.f32 %v2359_v18, %v3317_v8 }
 0x9a1   : > { %v2361_v20 = vsub.f32 %v2354_v15, %v2360_v19 }
 0x9a3   : > { %v2362_v22 = vmul.f32 %v2361_v20, %v2361_v20 }
 0x9a5   : > { %v2363_v23 = vsel %vm639_vm0, %v2362_v22, 0.0 }
 0x9a6   : > { %2364 = vadd.xlane.f32.xlu2 %v2363_v23 }
 0xa19   : > { %v2365_v25 = vpop.xlane.xlu2 %2364 }
 0xa1a   : > { %v2366_v27 = vmul.f32 %v2365_v25, %v3317_v8  ;;  %v2945_v8 = vld [vmem:[%s3742_s11] ss:$0 sm:$0xff] }
 0xa1c   : > { %v2367_v29 = vadd.f32 1e-05, %v2366_v27 }
 0xa1e   : > { %2969 = vrsqrt.f32 %v2367_v29  ;;  %vm2374_vm12 = vweird.f32 %v2367_v29 }
 0xa24   : > { %v2970_v31 = vpop.eup %2969 }
 0xa25   : > { %v2369_v33 = vmul.f32 %v2970_v31, %v2367_v29  ;;  %vm2375_vm11 = vweird.f32 %v2970_v31 }
 0xa26   : > { %vm2376_vm13 = vmor %vm2374_vm12, %vm2375_vm11 }
 0xa27   : > { %v2370_v36 = vmul.f32 %v2970_v31, %v2369_v33 }
 0xa29   : > { %v2371_v37 = vmul.f32 0.5, %v2370_v36 }
 0xa2b   : > { %v2372_v38 = vsub.f32 1.5, %v2371_v37 }
 0xa2d   : > { %v2373_v43 = vmul.f32 %v2970_v31, %v2372_v38 }
 0xa2f   : > { %v2377_v44 = vsel %vm2376_vm13, %v2970_v31, %v2373_v43 }
 0xa30   : > { %v2378_v47 = vmul.f32 %v2377_v44, %v2361_v20 }
 0xa32   : > { %v2382_v48 = vmul.f32 %v2945_v8, %v2378_v47 }
 0xa34   : > { %v2386_v26 = vadd.f32 %v2946_v46, %v2382_v48 }
 0xa36   : > { %v2387_v32 = vpack.c.bf16 %v2386_v26, %v2386_v26 }
 0xa38   : > { %2389 = vst.msk [vmem:[#allocation2] sm:$0xf] %vm2388_vm14, %v2387_v32 }
 0xa3f   : > { %v2391_v34 = vld [vmem:[#allocation2] sm:$0xf] }
 0xa40   : > { %2728 = vmatmul.msk.bf16.vlgmr.msrb.gmra.mxu3 %vm639_vm0, %v2391_v34 }
 0xac3   : > { %v2425_v58 = vpop.f32.mrf.mxu3 }
 0xac4   : > { %v2426_v50 = vadd.f32 %v2947_v56, %v2425_v58 }
 0xac6   : > { %v2429_v59 = vmul.f32 %v2426_v50, %v2426_v50 }
 0xac8   : > { %v2430_v60 = vmul.f32 %v2429_v59, %v2426_v50 }
 0xaca   : > { %v2431_v61 = vmul.f32 0.044715, %v2430_v60 }
 0xacb   : > { %v2427_v40 = vpop.f32.mrf.mxu3 }
 0xacc   : > { %v2432_v62 = vadd.f32 %v2431_v61, %v2426_v50 }
 0xace   : > { %v2433_v55 = vmul.f32 0.7978846, %v2432_v62 }
 0xad0   : > { %2971 = vtanh.f32 %v2433_v55 }
 0xad6   : > { %v2972_v63 = vpop.eup %2971 }
 0xad7   : > { %v2435_v0 = vadd.f32 1.0, %v2972_v63 }
 0xad9   : > { %v2436_v1 = vmul.f32 0.5, %v2435_v0 }
 0xadb   : > { %v2437_v51 = vmul.f32 %v2436_v1, %v2426_v50 }
 0xadd   : > { %v2439_v3 = vpack.c.bf16 %v2437_v51, %v2437_v51 }
 0xadf   : > { %2512 = vmatmul.bf16.vlgmr.msra.gmra.mxu0 %v2439_v3 }
 0xb5c   : > { %v2513_v5 = vpop.f32.mrf.mxu0 }
 0xb5d   : > { %v2517_v2 = vadd.f32 %v2513_v5, %v2438_v4 }
 0xb5f   : > { %2518 = vst.msk [vmem:[#allocation3] sm:$0xff] %vm639_vm0, %v2517_v2 }
 0xb64   : > { %v2515_v53 = vpop.f32.mrf.mxu0 }
 0xb66   : > { %v2522_v7 = vld [vmem:[#allocation3] sm:$0xff] }
 0xb67   : > { %v2527_v9 = vadd.f32 %v2948_v6, %v2522_v7 }
 0xb69   : > { %2528 = vst.msk [vmem:[%s617_s24] sm:$0xff] %vm639_vm0, %v2527_v9 }
 0xb6a   : > { %3061 = shalt.err (!%p3058_p9)
}
 0xb6b   : > { %2791 = dma.vmem_to_hbm [thread:$0]  (%p3265_p4), %s2543_s23, 128, %s2545_s20, %s2530_s27  }
 0xb6c PF: > { %s3777_s0 = sld [smem:[#allocation16_spill]] }
 0xb6d   : > { %s3778_s1 = sld [smem:[#allocation13_spill]] }
 0xb72   : > { %p2808_p10 = scmp.ge.s32.totalorder %s3777_s0, 2 }
 0xb73   : > { %s2556_s2 = sand.u32 1, %s3778_s1  }
 0xb74   : > { %p2801_p11 = pnand %p2808_p10, %p3272_p8  ;;  %s2557_s30 = scalar_lea.sflag [#allocation6], %s2556_s2 }
 0xb76   : > { %p2802_p12 = pneg %p2801_p11 }
 0xb78   : > { %3095 = dma.done.wait (%p2802_p12), %s2557_s30, 128  }
 0xb79   : > { %3097 = vsyncadd (%p2802_p12), %s2557_s30, 4294967168  ;;  %s32_s29 = sadd.s32 1, %s3777_s0   ;;  %s3780_s19 = sld [smem:[#allocation14_spill]] }
 0xb7a   : > { %p29_p13 = scmp.ge.s32.totalorder %s32_s29, 4   ;;  %s3781_s26 = sld [smem:[#allocation20_spill]] }
 0xb7b   : > { %s3782_s27 = sld [smem:[#allocation15_spill]]  ;;  %s3784_s24 = smov %s3104_s25 }
 0xb7c   : > { %s3783_s28 = sld [smem:[#allocation17_spill]]  ;;  %31 = sbr.rel (!%p29_p13) target bundleno = 10 (0xa), region = 147 }
 0xb7f   : > { %s3785_s25 = smov %s3780_s19 }
 0xb81   :  { %2563 = vsyncpa [#allocation5], 1 }
 0xb82   :  { %2565 = vsyncpa [#allocation5 + $0x1], 1 }
 0xb83   :  { %2566 = vsyncpa [#allocation8], 1 }
 0xb84   :  { %2567 = vsyncpa [#allocation6], 1 }
 0xb85   :  { %2569 = vsyncpa [#allocation6 + $0x1], 1 }

</bundles_post_ra>
